<compile_context>
chip_gen: v7x
topology: tpu7x:2x2x1
jax: 0.10.0
libtpu: 0.0.40
codegen_flags: <defaults>
</compile_context>

<pallas_src>
import jax
import jax.numpy as jnp
from jax.experimental import pallas as pl
from jax.experimental.pallas import tpu as pltpu

N_NODES = 4            # hosts in the *_1_4 variant
EMB = 5                # per-direction GRU hidden size
D_FEATS = 6            # per-host scheduler features fed to `find`
HID1, HID2, HID3 = 64, 64, 32
N_LAYERS = 3
LEAKY_SLOPE = 0.01     # nn.LeakyReLU default

# TODO(synk): Coeff_Energy / Coeff_Latency are COSCO module-level constants not
# included in the snippet; deterministic synthetic stand-ins are used.
COEFF_ENERGY = 0.5
COEFF_LATENCY = 0.5

VMEM_SPEC = pl.BlockSpec(memory_space=pltpu.MemorySpace.VMEM)


def _leaky(x):
    return jnp.maximum(x, LEAKY_SLOPE * x)


def _dot(a, b):
    return jnp.dot(a, b, preferred_element_type=jnp.float32)


# ---------------------------------------------------------------------------
# The single fused kernel.
# ---------------------------------------------------------------------------
def fused_forward_kernel(adj_ref, data_ref, d_ref, *refs):
    """3 gated-RGCN layers + `find` MLP + coeff reduction, all in VMEM."""
    layer_refs = [refs[4 * l: 4 * l + 4] for l in range(N_LAYERS)]
    (w1_hf_ref, w1_hb_ref, w1_d_ref, b1_ref,
     w2_ref, b2_ref, w3_ref, b3_ref, w4_ref, b4_ref,
     coeff_ref, scalar_ref, y_ref) = refs[4 * N_LAYERS:]

    adj = adj_ref[...]                                    # (N, N)

    def gru_direction(xs, wih_ref, whh_ref, bih_ref, bhh_ref, d_idx, reverse):
        # Gate axis is a leading ref dim -> no sub-128 lane slicing.
        wir, wiz, win = wih_ref[d_idx, 0], wih_ref[d_idx, 1], wih_ref[d_idx, 2]
        whr, whz, whn = whh_ref[d_idx, 0], whh_ref[d_idx, 1], whh_ref[d_idx, 2]
        bir, biz, bin_ = bih_ref[d_idx, 0], bih_ref[d_idx, 1], bih_ref[d_idx, 2]
        bhr, bhz, bhn = bhh_ref[d_idx, 0], bhh_ref[d_idx, 1], bhh_ref[d_idx, 2]
        order = list(range(len(xs)))
        if reverse:
            order = order[::-1]
        h = None                                          # h0 == 0
        for t in order:
            x = xs[t]
            gir = _dot(x, wir) + bir
            giz = _dot(x, wiz) + biz
            gin = _dot(x, win) + bin_
            if h is None:                                 # skip 0 @ W_hh matmuls
                ghr, ghz, ghn = bhr, bhz, bhn
            else:
                ghr = _dot(h, whr) + bhr
                ghz = _dot(h, whz) + bhz
                ghn = _dot(h, whn) + bhn
            r = jax.nn.sigmoid(gir + ghr)
            z = jax.nn.sigmoid(giz + ghz)
            c = jnp.tanh(gin + r * ghn)
            if h is None:
                h = (1.0 - z) * c
            else:
                h = (1.0 - z) * c + z * h
        return h                                          # (N, EMB)

    # ---- gated RGCN chain; chunks kept separate (no lane-axis concat) -------
    chunks = [data_ref[...]]                              # layer-0 input (N, 1)
    for l in range(N_LAYERS):
        wih_r, whh_r, bih_r, bhh_r = layer_refs[l]
        aggs = [_dot(adj, c) for c in chunks]             # message passing A @ H
        hf = gru_direction(aggs, wih_r, whh_r, bih_r, bhh_r, 0, reverse=False)
        hb = gru_direction(aggs, wih_r, whh_r, bih_r, bhh_r, 1, reverse=True)
        chunks = [_leaky(hf), _leaky(hb)]                 # == leaky(concat) chunk-wise
    hf3, hb3 = chunks                                     # each (N, EMB)

    # ---- `find` MLP. First layer contracts per-node W1 blocks directly, so
    # the (N, 2*EMB)/(N, D_FEATS) activations never need an in-kernel flatten.
    d_feats = d_ref[...]                                  # (N, D_FEATS)
    h1 = b1_ref[...]                                      # (1, HID1)
    for n in range(N_NODES):
        h1 = h1 + _dot(hf3[n:n + 1, :], w1_hf_ref[n])
        h1 = h1 + _dot(hb3[n:n + 1, :], w1_hb_ref[n])
        h1 = h1 + _dot(d_feats[n:n + 1, :], w1_d_ref[n])
    h1 = _leaky(h1)
    h2 = _leaky(_dot(h1, w2_ref[...]) + b2_ref[...])
    h3 = _leaky(_dot(h2, w3_ref[...]) + b3_ref[...])
    y = jax.nn.sigmoid(_dot(h3, w4_ref[...]) + b4_ref[...])     # (1, 2)

    y_ref[...] = y
    # Inference branch of the module: Coeff_Energy*x[0] + Coeff_Latency*x[1].
    scalar_ref[...] = jnp.sum(y * coeff_ref[...], axis=-1, keepdims=True)


# ---------------------------------------------------------------------------
# Wrapper (mirrors energy_latencyGNN_1_4.forward, inference branch).
# ---------------------------------------------------------------------------
def energy_latency_gnn_1_4_forward(adj, data, d, gnn_params, mlp_params):
    # TODO(synk): for BaGTI's repeated candidate evaluation, batch B candidates
    # into (B, ...) inputs to actually fill the MXU; single-graph semantics are
    # kept here to match the module's forward.
    w1, b1, w2, b2, w3, b3, w4, b4 = mlp_params
    # Split W1 according to the PyTorch flatten order:
    #   flat = [x.view(-1)  (node-major, [h_fwd | h_bwd] per node), d.view(-1)]
    w1_x = w1[: N_NODES * 2 * EMB].reshape(N_NODES, 2 * EMB, HID1)
    w1_hf = w1_x[:, :EMB, :]                              # (N, EMB, HID1)
    w1_hb = w1_x[:, EMB:, :]                              # (N, EMB, HID1)
    w1_d = w1[N_NODES * 2 * EMB:].reshape(N_NODES, D_FEATS, HID1)
    coeff = jnp.array([[COEFF_ENERGY, COEFF_LATENCY]], dtype=jnp.float32)

    inputs = [adj, data, d]
    for layer in gnn_params:
        inputs.extend(layer)                              # (wih, whh, bih, bhh)
    inputs.extend([w1_hf, w1_hb, w1_d, b1, w2, b2, w3, b3, w4, b4, coeff])

    scalar, y = pl.pallas_call(
        fused_forward_kernel,
        out_shape=(jax.ShapeDtypeStruct((1, 1), jnp.float32),
                   jax.ShapeDtypeStruct((1, 2), jnp.float32)),
        in_specs=[VMEM_SPEC] * len(inputs),
        out_specs=(VMEM_SPEC, VMEM_SPEC),
    )(*inputs)
    return scalar[0, 0], y[0]


# ---------------------------------------------------------------------------
# Deterministic synthetic parameters.
# ---------------------------------------------------------------------------
def _uniform(key, shape, scale):
    return jax.random.uniform(key, shape, jnp.float32, -scale, scale)


def _gru_layer_params(key, in_feats, out_feats):
    """(direction, gate, in, out) layout: gates on a leading axis, no slicing."""
    ks = jax.random.split(key, 4)
    s = 1.0 / jnp.sqrt(jnp.float32(out_feats))
    wih = _uniform(ks[0], (2, 3, in_feats, out_feats), s)
    whh = _uniform(ks[1], (2, 3, out_feats, out_feats), s)
    bih = _uniform(ks[2], (2, 3, 1, out_feats), s)
    bhh = _uniform(ks[3], (2, 3, 1, out_feats), s)
    return wih, whh, bih, bhh


def _linear_params(key, fan_in, fan_out):
    kw, kb = jax.random.split(key)
    s = 1.0 / jnp.sqrt(jnp.float32(fan_in))
    return _uniform(kw, (fan_in, fan_out), s), _uniform(kb, (1, fan_out), s)


def build_params(key):
    keys = jax.random.split(key, 8)
    cfgs = [(1, EMB), (EMB, EMB), (EMB, EMB)]
    gnn = [_gru_layer_params(keys[i], i_f, o_f) for i, (i_f, o_f) in enumerate(cfgs)]
    in_dim = N_NODES * 2 * EMB + N_NODES * D_FEATS        # 64
    w1, b1 = _linear_params(keys[3], in_dim, HID1)
    w2, b2 = _linear_params(keys[4], HID1, HID2)
    w3, b3 = _linear_params(keys[5], HID2, HID3)
    w4, b4 = _linear_params(keys[6], HID3, 2)
    return gnn, (w1, b1, w2, b2, w3, b3, w4, b4)


if __name__ == "__main__":
    key = jax.random.PRNGKey(0)
    k_data, k_d, k_params = jax.random.split(key, 3)

    # Deterministic 4-node directed ring graph with self loops.
    adj = jnp.eye(N_NODES, dtype=jnp.float32)
    adj = adj + jnp.roll(jnp.eye(N_NODES, dtype=jnp.float32), shift=1, axis=1)

    data = jax.random.normal(k_data, (N_NODES, 1), dtype=jnp.float32)        # graph.ndata['h']
    d = jax.random.normal(k_d, (N_NODES, D_FEATS), dtype=jnp.float32)        # per-host features

    gnn_params, mlp_params = build_params(k_params)

    fwd = jax.jit(energy_latency_gnn_1_4_forward)
    scalar, pair = fwd(adj, data, d, gnn_params, mlp_params)
    jax.block_until_ready(scalar)
    jax.block_until_ready(pair)
    assert bool(jnp.isfinite(scalar)) and pair.shape == (2,)
    print("KERNEL_OK")
</pallas_src>

<mosaic_0001>
module attributes {stable_mosaic.version = 11 : i64} {
  func.func @fused_forward_kernel(%arg0: memref<4x4xf32, #tpu.memory_space<vmem>>, %arg1: memref<4x1xf32, #tpu.memory_space<vmem>>, %arg2: memref<4x6xf32, #tpu.memory_space<vmem>>, %arg3: memref<2x3x1x5xf32, #tpu.memory_space<vmem>>, %arg4: memref<2x3x5x5xf32, #tpu.memory_space<vmem>>, %arg5: memref<2x3x1x5xf32, #tpu.memory_space<vmem>>, %arg6: memref<2x3x1x5xf32, #tpu.memory_space<vmem>>, %arg7: memref<2x3x5x5xf32, #tpu.memory_space<vmem>>, %arg8: memref<2x3x5x5xf32, #tpu.memory_space<vmem>>, %arg9: memref<2x3x1x5xf32, #tpu.memory_space<vmem>>, %arg10: memref<2x3x1x5xf32, #tpu.memory_space<vmem>>, %arg11: memref<2x3x5x5xf32, #tpu.memory_space<vmem>>, %arg12: memref<2x3x5x5xf32, #tpu.memory_space<vmem>>, %arg13: memref<2x3x1x5xf32, #tpu.memory_space<vmem>>, %arg14: memref<2x3x1x5xf32, #tpu.memory_space<vmem>>, %arg15: memref<4x5x64xf32, #tpu.memory_space<vmem>>, %arg16: memref<4x5x64xf32, #tpu.memory_space<vmem>>, %arg17: memref<4x6x64xf32, #tpu.memory_space<vmem>>, %arg18: memref<1x64xf32, #tpu.memory_space<vmem>>, %arg19: memref<64x64xf32, #tpu.memory_space<vmem>>, %arg20: memref<1x64xf32, #tpu.memory_space<vmem>>, %arg21: memref<64x32xf32, #tpu.memory_space<vmem>>, %arg22: memref<1x32xf32, #tpu.memory_space<vmem>>, %arg23: memref<32x2xf32, #tpu.memory_space<vmem>>, %arg24: memref<1x2xf32, #tpu.memory_space<vmem>>, %arg25: memref<1x2xf32, #tpu.memory_space<vmem>>, %arg26: memref<1x1xf32, #tpu.memory_space<vmem>>, %arg27: memref<1x2xf32, #tpu.memory_space<vmem>>) attributes {dimension_semantics = [], scalar_prefetch = 0 : i64, scratch_operands = 0 : i64, tpu.core_type = #tpu.core_type<tc>} {
    %c0 = arith.constant 0 : index
    %c0_0 = arith.constant 0 : index
    %0 = vector.load %arg0[%c0, %c0_0] : memref<4x4xf32, #tpu.memory_space<vmem>>, vector<4x4xf32>
    %c0_1 = arith.constant 0 : index
    %c0_2 = arith.constant 0 : index
    %1 = vector.load %arg1[%c0_1, %c0_2] : memref<4x1xf32, #tpu.memory_space<vmem>>, vector<4x1xf32>
    %cst = arith.constant dense<0.000000e+00> : vector<4x1xf32>
    %2 = tpu.matmul %0, %1, %cst {dimension_numbers = #tpu.dot_dimension_numbers<[1], [0], [0], [1], [0, 0, 1, 1], [], []>} : vector<4x4xf32>, vector<4x1xf32>, vector<4x1xf32> -> vector<4x1xf32>
    %c0_3 = arith.constant 0 : index
    %c0_4 = arith.constant 0 : index
    %c0_5 = arith.constant 0 : index
    %c0_6 = arith.constant 0 : index
    %3 = vector.load %arg3[%c0_3, %c0_4, %c0_5, %c0_6] : memref<2x3x1x5xf32, #tpu.memory_space<vmem>>, vector<1x1x1x5xf32>
    %4 = vector.shape_cast %3 : vector<1x1x1x5xf32> to vector<1x5xf32>
    %c0_7 = arith.constant 0 : index
    %c1 = arith.constant 1 : index
    %c0_8 = arith.constant 0 : index
    %c0_9 = arith.constant 0 : index
    %5 = vector.load %arg3[%c0_7, %c1, %c0_8, %c0_9] : memref<2x3x1x5xf32, #tpu.memory_space<vmem>>, vector<1x1x1x5xf32>
    %6 = vector.shape_cast %5 : vector<1x1x1x5xf32> to vector<1x5xf32>
    %c0_10 = arith.constant 0 : index
    %c2 = arith.constant 2 : index
    %c0_11 = arith.constant 0 : index
    %c0_12 = arith.constant 0 : index
    %7 = vector.load %arg3[%c0_10, %c2, %c0_11, %c0_12] : memref<2x3x1x5xf32, #tpu.memory_space<vmem>>, vector<1x1x1x5xf32>
    %8 = vector.shape_cast %7 : vector<1x1x1x5xf32> to vector<1x5xf32>
    %c0_13 = arith.constant 0 : index
    %c0_14 = arith.constant 0 : index
    %c0_15 = arith.constant 0 : index
    %c0_16 = arith.constant 0 : index
    %9 = vector.load %arg5[%c0_13, %c0_14, %c0_15, %c0_16] : memref<2x3x1x5xf32, #tpu.memory_space<vmem>>, vector<1x1x1x5xf32>
    %10 = vector.shape_cast %9 : vector<1x1x1x5xf32> to vector<1x5xf32>
    %c0_17 = arith.constant 0 : index
    %c1_18 = arith.constant 1 : index
    %c0_19 = arith.constant 0 : index
    %c0_20 = arith.constant 0 : index
    %11 = vector.load %arg5[%c0_17, %c1_18, %c0_19, %c0_20] : memref<2x3x1x5xf32, #tpu.memory_space<vmem>>, vector<1x1x1x5xf32>
    %12 = vector.shape_cast %11 : vector<1x1x1x5xf32> to vector<1x5xf32>
    %c0_21 = arith.constant 0 : index
    %c2_22 = arith.constant 2 : index
    %c0_23 = arith.constant 0 : index
    %c0_24 = arith.constant 0 : index
    %13 = vector.load %arg5[%c0_21, %c2_22, %c0_23, %c0_24] : memref<2x3x1x5xf32, #tpu.memory_space<vmem>>, vector<1x1x1x5xf32>
    %14 = vector.shape_cast %13 : vector<1x1x1x5xf32> to vector<1x5xf32>
    %c0_25 = arith.constant 0 : index
    %c0_26 = arith.constant 0 : index
    %c0_27 = arith.constant 0 : index
    %c0_28 = arith.constant 0 : index
    %15 = vector.load %arg6[%c0_25, %c0_26, %c0_27, %c0_28] : memref<2x3x1x5xf32, #tpu.memory_space<vmem>>, vector<1x1x1x5xf32>
    %16 = vector.shape_cast %15 : vector<1x1x1x5xf32> to vector<1x5xf32>
    %c0_29 = arith.constant 0 : index
    %c1_30 = arith.constant 1 : index
    %c0_31 = arith.constant 0 : index
    %c0_32 = arith.constant 0 : index
    %17 = vector.load %arg6[%c0_29, %c1_30, %c0_31, %c0_32] : memref<2x3x1x5xf32, #tpu.memory_space<vmem>>, vector<1x1x1x5xf32>
    %18 = vector.shape_cast %17 : vector<1x1x1x5xf32> to vector<1x5xf32>
    %c0_33 = arith.constant 0 : index
    %c2_34 = arith.constant 2 : index
    %c0_35 = arith.constant 0 : index
    %c0_36 = arith.constant 0 : index
    %19 = vector.load %arg6[%c0_33, %c2_34, %c0_35, %c0_36] : memref<2x3x1x5xf32, #tpu.memory_space<vmem>>, vector<1x1x1x5xf32>
    %20 = vector.shape_cast %19 : vector<1x1x1x5xf32> to vector<1x5xf32>
    %cst_37 = arith.constant dense<0.000000e+00> : vector<4x5xf32>
    %21 = tpu.matmul %2, %4, %cst_37 {dimension_numbers = #tpu.dot_dimension_numbers<[1], [0], [0], [1], [0, 0, 1, 1], [], []>} : vector<4x1xf32>, vector<1x5xf32>, vector<4x5xf32> -> vector<4x5xf32>
    %22 = vector.broadcast %10 : vector<1x5xf32> to vector<4x5xf32>
    %23 = arith.addf %21, %22 : vector<4x5xf32>
    %cst_38 = arith.constant dense<0.000000e+00> : vector<4x5xf32>
    %24 = tpu.matmul %2, %6, %cst_38 {dimension_numbers = #tpu.dot_dimension_numbers<[1], [0], [0], [1], [0, 0, 1, 1], [], []>} : vector<4x1xf32>, vector<1x5xf32>, vector<4x5xf32> -> vector<4x5xf32>
    %25 = vector.broadcast %12 : vector<1x5xf32> to vector<4x5xf32>
    %26 = arith.addf %24, %25 : vector<4x5xf32>
    %cst_39 = arith.constant dense<0.000000e+00> : vector<4x5xf32>
    %27 = tpu.matmul %2, %8, %cst_39 {dimension_numbers = #tpu.dot_dimension_numbers<[1], [0], [0], [1], [0, 0, 1, 1], [], []>} : vector<4x1xf32>, vector<1x5xf32>, vector<4x5xf32> -> vector<4x5xf32>
    %28 = vector.broadcast %14 : vector<1x5xf32> to vector<4x5xf32>
    %29 = arith.addf %27, %28 : vector<4x5xf32>
    %30 = vector.broadcast %16 : vector<1x5xf32> to vector<4x5xf32>
    %31 = arith.addf %23, %30 : vector<4x5xf32>
    %32 = arith.negf %31 : vector<4x5xf32>
    %33 = math.exp %32 : vector<4x5xf32>
    %cst_40 = arith.constant 1.000000e+00 : f32
    %34 = vector.broadcast %cst_40 : f32 to vector<4x5xf32>
    %35 = arith.addf %34, %33 : vector<4x5xf32>
    %36 = arith.divf %34, %35 : vector<4x5xf32>
    %37 = vector.broadcast %18 : vector<1x5xf32> to vector<4x5xf32>
    %38 = arith.addf %26, %37 : vector<4x5xf32>
    %39 = arith.negf %38 : vector<4x5xf32>
    %40 = math.exp %39 : vector<4x5xf32>
    %cst_41 = arith.constant 1.000000e+00 : f32
    %41 = vector.broadcast %cst_41 : f32 to vector<4x5xf32>
    %42 = arith.addf %41, %40 : vector<4x5xf32>
    %43 = arith.divf %41, %42 : vector<4x5xf32>
    %44 = vector.broadcast %20 : vector<1x5xf32> to vector<4x5xf32>
    %45 = arith.mulf %36, %44 : vector<4x5xf32>
    %46 = arith.addf %29, %45 : vector<4x5xf32>
    %47 = math.tanh %46 : vector<4x5xf32>
    %cst_42 = arith.constant 1.000000e+00 : f32
    %48 = vector.broadcast %cst_42 : f32 to vector<4x5xf32>
    %49 = arith.subf %48, %43 : vector<4x5xf32>
    %50 = arith.mulf %49, %47 : vector<4x5xf32>
    %c1_43 = arith.constant 1 : index
    %c0_44 = arith.constant 0 : index
    %c0_45 = arith.constant 0 : index
    %c0_46 = arith.constant 0 : index
    %51 = vector.load %arg3[%c1_43, %c0_44, %c0_45, %c0_46] : memref<2x3x1x5xf32, #tpu.memory_space<vmem>>, vector<1x1x1x5xf32>
    %52 = vector.shape_cast %51 : vector<1x1x1x5xf32> to vector<1x5xf32>
    %c1_47 = arith.constant 1 : index
    %c1_48 = arith.constant 1 : index
    %c0_49 = arith.constant 0 : index
    %c0_50 = arith.constant 0 : index
    %53 = vector.load %arg3[%c1_47, %c1_48, %c0_49, %c0_50] : memref<2x3x1x5xf32, #tpu.memory_space<vmem>>, vector<1x1x1x5xf32>
    %54 = vector.shape_cast %53 : vector<1x1x1x5xf32> to vector<1x5xf32>
    %c1_51 = arith.constant 1 : index
    %c2_52 = arith.constant 2 : index
    %c0_53 = arith.constant 0 : index
    %c0_54 = arith.constant 0 : index
    %55 = vector.load %arg3[%c1_51, %c2_52, %c0_53, %c0_54] : memref<2x3x1x5xf32, #tpu.memory_space<vmem>>, vector<1x1x1x5xf32>
    %56 = vector.shape_cast %55 : vector<1x1x1x5xf32> to vector<1x5xf32>
    %c1_55 = arith.constant 1 : index
    %c0_56 = arith.constant 0 : index
    %c0_57 = arith.constant 0 : index
    %c0_58 = arith.constant 0 : index
    %57 = vector.load %arg5[%c1_55, %c0_56, %c0_57, %c0_58] : memref<2x3x1x5xf32, #tpu.memory_space<vmem>>, vector<1x1x1x5xf32>
    %58 = vector.shape_cast %57 : vector<1x1x1x5xf32> to vector<1x5xf32>
    %c1_59 = arith.constant 1 : index
    %c1_60 = arith.constant 1 : index
    %c0_61 = arith.constant 0 : index
    %c0_62 = arith.constant 0 : index
    %59 = vector.load %arg5[%c1_59, %c1_60, %c0_61, %c0_62] : memref<2x3x1x5xf32, #tpu.memory_space<vmem>>, vector<1x1x1x5xf32>
    %60 = vector.shape_cast %59 : vector<1x1x1x5xf32> to vector<1x5xf32>
    %c1_63 = arith.constant 1 : index
    %c2_64 = arith.constant 2 : index
    %c0_65 = arith.constant 0 : index
    %c0_66 = arith.constant 0 : index
    %61 = vector.load %arg5[%c1_63, %c2_64, %c0_65, %c0_66] : memref<2x3x1x5xf32, #tpu.memory_space<vmem>>, vector<1x1x1x5xf32>
    %62 = vector.shape_cast %61 : vector<1x1x1x5xf32> to vector<1x5xf32>
    %c1_67 = arith.constant 1 : index
    %c0_68 = arith.constant 0 : index
    %c0_69 = arith.constant 0 : index
    %c0_70 = arith.constant 0 : index
    %63 = vector.load %arg6[%c1_67, %c0_68, %c0_69, %c0_70] : memref<2x3x1x5xf32, #tpu.memory_space<vmem>>, vector<1x1x1x5xf32>
    %64 = vector.shape_cast %63 : vector<1x1x1x5xf32> to vector<1x5xf32>
    %c1_71 = arith.constant 1 : index
    %c1_72 = arith.constant 1 : index
    %c0_73 = arith.constant 0 : index
    %c0_74 = arith.constant 0 : index
    %65 = vector.load %arg6[%c1_71, %c1_72, %c0_73, %c0_74] : memref<2x3x1x5xf32, #tpu.memory_space<vmem>>, vector<1x1x1x5xf32>
    %66 = vector.shape_cast %65 : vector<1x1x1x5xf32> to vector<1x5xf32>
    %c1_75 = arith.constant 1 : index
    %c2_76 = arith.constant 2 : index
    %c0_77 = arith.constant 0 : index
    %c0_78 = arith.constant 0 : index
    %67 = vector.load %arg6[%c1_75, %c2_76, %c0_77, %c0_78] : memref<2x3x1x5xf32, #tpu.memory_space<vmem>>, vector<1x1x1x5xf32>
    %68 = vector.shape_cast %67 : vector<1x1x1x5xf32> to vector<1x5xf32>
    %cst_79 = arith.constant dense<0.000000e+00> : vector<4x5xf32>
    %69 = tpu.matmul %2, %52, %cst_79 {dimension_numbers = #tpu.dot_dimension_numbers<[1], [0], [0], [1], [0, 0, 1, 1], [], []>} : vector<4x1xf32>, vector<1x5xf32>, vector<4x5xf32> -> vector<4x5xf32>
    %70 = vector.broadcast %58 : vector<1x5xf32> to vector<4x5xf32>
    %71 = arith.addf %69, %70 : vector<4x5xf32>
    %cst_80 = arith.constant dense<0.000000e+00> : vector<4x5xf32>
    %72 = tpu.matmul %2, %54, %cst_80 {dimension_numbers = #tpu.dot_dimension_numbers<[1], [0], [0], [1], [0, 0, 1, 1], [], []>} : vector<4x1xf32>, vector<1x5xf32>, vector<4x5xf32> -> vector<4x5xf32>
    %73 = vector.broadcast %60 : vector<1x5xf32> to vector<4x5xf32>
    %74 = arith.addf %72, %73 : vector<4x5xf32>
    %cst_81 = arith.constant dense<0.000000e+00> : vector<4x5xf32>
    %75 = tpu.matmul %2, %56, %cst_81 {dimension_numbers = #tpu.dot_dimension_numbers<[1], [0], [0], [1], [0, 0, 1, 1], [], []>} : vector<4x1xf32>, vector<1x5xf32>, vector<4x5xf32> -> vector<4x5xf32>
    %76 = vector.broadcast %62 : vector<1x5xf32> to vector<4x5xf32>
    %77 = arith.addf %75, %76 : vector<4x5xf32>
    %78 = vector.broadcast %64 : vector<1x5xf32> to vector<4x5xf32>
    %79 = arith.addf %71, %78 : vector<4x5xf32>
    %80 = arith.negf %79 : vector<4x5xf32>
    %81 = math.exp %80 : vector<4x5xf32>
    %cst_82 = arith.constant 1.000000e+00 : f32
    %82 = vector.broadcast %cst_82 : f32 to vector<4x5xf32>
    %83 = arith.addf %82, %81 : vector<4x5xf32>
    %84 = arith.divf %82, %83 : vector<4x5xf32>
    %85 = vector.broadcast %66 : vector<1x5xf32> to vector<4x5xf32>
    %86 = arith.addf %74, %85 : vector<4x5xf32>
    %87 = arith.negf %86 : vector<4x5xf32>
    %88 = math.exp %87 : vector<4x5xf32>
    %cst_83 = arith.constant 1.000000e+00 : f32
    %89 = vector.broadcast %cst_83 : f32 to vector<4x5xf32>
    %90 = arith.addf %89, %88 : vector<4x5xf32>
    %91 = arith.divf %89, %90 : vector<4x5xf32>
    %92 = vector.broadcast %68 : vector<1x5xf32> to vector<4x5xf32>
    %93 = arith.mulf %84, %92 : vector<4x5xf32>
    %94 = arith.addf %77, %93 : vector<4x5xf32>
    %95 = math.tanh %94 : vector<4x5xf32>
    %cst_84 = arith.constant 1.000000e+00 : f32
    %96 = vector.broadcast %cst_84 : f32 to vector<4x5xf32>
    %97 = arith.subf %96, %91 : vector<4x5xf32>
    %98 = arith.mulf %97, %95 : vector<4x5xf32>
    %cst_85 = arith.constant 0.00999999977 : f32
    %99 = vector.broadcast %cst_85 : f32 to vector<4x5xf32>
    %100 = arith.mulf %99, %50 : vector<4x5xf32>
    %101 = arith.maximumf %50, %100 : vector<4x5xf32>
    %cst_86 = arith.constant 0.00999999977 : f32
    %102 = vector.broadcast %cst_86 : f32 to vector<4x5xf32>
    %103 = arith.mulf %102, %98 : vector<4x5xf32>
    %104 = arith.maximumf %98, %103 : vector<4x5xf32>
    %cst_87 = arith.constant dense<0.000000e+00> : vector<4x5xf32>
    %105 = tpu.matmul %0, %101, %cst_87 {dimension_numbers = #tpu.dot_dimension_numbers<[1], [0], [0], [1], [0, 0, 1, 1], [], []>} : vector<4x4xf32>, vector<4x5xf32>, vector<4x5xf32> -> vector<4x5xf32>
    %cst_88 = arith.constant dense<0.000000e+00> : vector<4x5xf32>
    %106 = tpu.matmul %0, %104, %cst_88 {dimension_numbers = #tpu.dot_dimension_numbers<[1], [0], [0], [1], [0, 0, 1, 1], [], []>} : vector<4x4xf32>, vector<4x5xf32>, vector<4x5xf32> -> vector<4x5xf32>
    %c0_89 = arith.constant 0 : index
    %c0_90 = arith.constant 0 : index
    %c0_91 = arith.constant 0 : index
    %c0_92 = arith.constant 0 : index
    %107 = vector.load %arg7[%c0_89, %c0_90, %c0_91, %c0_92] : memref<2x3x5x5xf32, #tpu.memory_space<vmem>>, vector<1x1x5x5xf32>
    %108 = vector.shape_cast %107 : vector<1x1x5x5xf32> to vector<5x5xf32>
    %c0_93 = arith.constant 0 : index
    %c1_94 = arith.constant 1 : index
    %c0_95 = arith.constant 0 : index
    %c0_96 = arith.constant 0 : index
    %109 = vector.load %arg7[%c0_93, %c1_94, %c0_95, %c0_96] : memref<2x3x5x5xf32, #tpu.memory_space<vmem>>, vector<1x1x5x5xf32>
    %110 = vector.shape_cast %109 : vector<1x1x5x5xf32> to vector<5x5xf32>
    %c0_97 = arith.constant 0 : index
    %c2_98 = arith.constant 2 : index
    %c0_99 = arith.constant 0 : index
    %c0_100 = arith.constant 0 : index
    %111 = vector.load %arg7[%c0_97, %c2_98, %c0_99, %c0_100] : memref<2x3x5x5xf32, #tpu.memory_space<vmem>>, vector<1x1x5x5xf32>
    %112 = vector.shape_cast %111 : vector<1x1x5x5xf32> to vector<5x5xf32>
    %c0_101 = arith.constant 0 : index
    %c0_102 = arith.constant 0 : index
    %c0_103 = arith.constant 0 : index
    %c0_104 = arith.constant 0 : index
    %113 = vector.load %arg8[%c0_101, %c0_102, %c0_103, %c0_104] : memref<2x3x5x5xf32, #tpu.memory_space<vmem>>, vector<1x1x5x5xf32>
    %114 = vector.shape_cast %113 : vector<1x1x5x5xf32> to vector<5x5xf32>
    %c0_105 = arith.constant 0 : index
    %c1_106 = arith.constant 1 : index
    %c0_107 = arith.constant 0 : index
    %c0_108 = arith.constant 0 : index
    %115 = vector.load %arg8[%c0_105, %c1_106, %c0_107, %c0_108] : memref<2x3x5x5xf32, #tpu.memory_space<vmem>>, vector<1x1x5x5xf32>
    %116 = vector.shape_cast %115 : vector<1x1x5x5xf32> to vector<5x5xf32>
    %c0_109 = arith.constant 0 : index
    %c2_110 = arith.constant 2 : index
    %c0_111 = arith.constant 0 : index
    %c0_112 = arith.constant 0 : index
    %117 = vector.load %arg8[%c0_109, %c2_110, %c0_111, %c0_112] : memref<2x3x5x5xf32, #tpu.memory_space<vmem>>, vector<1x1x5x5xf32>
    %118 = vector.shape_cast %117 : vector<1x1x5x5xf32> to vector<5x5xf32>
    %c0_113 = arith.constant 0 : index
    %c0_114 = arith.constant 0 : index
    %c0_115 = arith.constant 0 : index
    %c0_116 = arith.constant 0 : index
    %119 = vector.load %arg9[%c0_113, %c0_114, %c0_115, %c0_116] : memref<2x3x1x5xf32, #tpu.memory_space<vmem>>, vector<1x1x1x5xf32>
    %120 = vector.shape_cast %119 : vector<1x1x1x5xf32> to vector<1x5xf32>
    %c0_117 = arith.constant 0 : index
    %c1_118 = arith.constant 1 : index
    %c0_119 = arith.constant 0 : index
    %c0_120 = arith.constant 0 : index
    %121 = vector.load %arg9[%c0_117, %c1_118, %c0_119, %c0_120] : memref<2x3x1x5xf32, #tpu.memory_space<vmem>>, vector<1x1x1x5xf32>
    %122 = vector.shape_cast %121 : vector<1x1x1x5xf32> to vector<1x5xf32>
    %c0_121 = arith.constant 0 : index
    %c2_122 = arith.constant 2 : index
    %c0_123 = arith.constant 0 : index
    %c0_124 = arith.constant 0 : index
    %123 = vector.load %arg9[%c0_121, %c2_122, %c0_123, %c0_124] : memref<2x3x1x5xf32, #tpu.memory_space<vmem>>, vector<1x1x1x5xf32>
    %124 = vector.shape_cast %123 : vector<1x1x1x5xf32> to vector<1x5xf32>
    %c0_125 = arith.constant 0 : index
    %c0_126 = arith.constant 0 : index
    %c0_127 = arith.constant 0 : index
    %c0_128 = arith.constant 0 : index
    %125 = vector.load %arg10[%c0_125, %c0_126, %c0_127, %c0_128] : memref<2x3x1x5xf32, #tpu.memory_space<vmem>>, vector<1x1x1x5xf32>
    %126 = vector.shape_cast %125 : vector<1x1x1x5xf32> to vector<1x5xf32>
    %c0_129 = arith.constant 0 : index
    %c1_130 = arith.constant 1 : index
    %c0_131 = arith.constant 0 : index
    %c0_132 = arith.constant 0 : index
    %127 = vector.load %arg10[%c0_129, %c1_130, %c0_131, %c0_132] : memref<2x3x1x5xf32, #tpu.memory_space<vmem>>, vector<1x1x1x5xf32>
    %128 = vector.shape_cast %127 : vector<1x1x1x5xf32> to vector<1x5xf32>
    %c0_133 = arith.constant 0 : index
    %c2_134 = arith.constant 2 : index
    %c0_135 = arith.constant 0 : index
    %c0_136 = arith.constant 0 : index
    %129 = vector.load %arg10[%c0_133, %c2_134, %c0_135, %c0_136] : memref<2x3x1x5xf32, #tpu.memory_space<vmem>>, vector<1x1x1x5xf32>
    %130 = vector.shape_cast %129 : vector<1x1x1x5xf32> to vector<1x5xf32>
    %cst_137 = arith.constant dense<0.000000e+00> : vector<4x5xf32>
    %131 = tpu.matmul %105, %108, %cst_137 {dimension_numbers = #tpu.dot_dimension_numbers<[1], [0], [0], [1], [0, 0, 1, 1], [], []>} : vector<4x5xf32>, vector<5x5xf32>, vector<4x5xf32> -> vector<4x5xf32>
    %132 = vector.broadcast %120 : vector<1x5xf32> to vector<4x5xf32>
    %133 = arith.addf %131, %132 : vector<4x5xf32>
    %cst_138 = arith.constant dense<0.000000e+00> : vector<4x5xf32>
    %134 = tpu.matmul %105, %110, %cst_138 {dimension_numbers = #tpu.dot_dimension_numbers<[1], [0], [0], [1], [0, 0, 1, 1], [], []>} : vector<4x5xf32>, vector<5x5xf32>, vector<4x5xf32> -> vector<4x5xf32>
    %135 = vector.broadcast %122 : vector<1x5xf32> to vector<4x5xf32>
    %136 = arith.addf %134, %135 : vector<4x5xf32>
    %cst_139 = arith.constant dense<0.000000e+00> : vector<4x5xf32>
    %137 = tpu.matmul %105, %112, %cst_139 {dimension_numbers = #tpu.dot_dimension_numbers<[1], [0], [0], [1], [0, 0, 1, 1], [], []>} : vector<4x5xf32>, vector<5x5xf32>, vector<4x5xf32> -> vector<4x5xf32>
    %138 = vector.broadcast %124 : vector<1x5xf32> to vector<4x5xf32>
    %139 = arith.addf %137, %138 : vector<4x5xf32>
    %140 = vector.broadcast %126 : vector<1x5xf32> to vector<4x5xf32>
    %141 = arith.addf %133, %140 : vector<4x5xf32>
    %142 = arith.negf %141 : vector<4x5xf32>
    %143 = math.exp %142 : vector<4x5xf32>
    %cst_140 = arith.constant 1.000000e+00 : f32
    %144 = vector.broadcast %cst_140 : f32 to vector<4x5xf32>
    %145 = arith.addf %144, %143 : vector<4x5xf32>
    %146 = arith.divf %144, %145 : vector<4x5xf32>
    %147 = vector.broadcast %128 : vector<1x5xf32> to vector<4x5xf32>
    %148 = arith.addf %136, %147 : vector<4x5xf32>
    %149 = arith.negf %148 : vector<4x5xf32>
    %150 = math.exp %149 : vector<4x5xf32>
    %cst_141 = arith.constant 1.000000e+00 : f32
    %151 = vector.broadcast %cst_141 : f32 to vector<4x5xf32>
    %152 = arith.addf %151, %150 : vector<4x5xf32>
    %153 = arith.divf %151, %152 : vector<4x5xf32>
    %154 = vector.broadcast %130 : vector<1x5xf32> to vector<4x5xf32>
    %155 = arith.mulf %146, %154 : vector<4x5xf32>
    %156 = arith.addf %139, %155 : vector<4x5xf32>
    %157 = math.tanh %156 : vector<4x5xf32>
    %cst_142 = arith.constant 1.000000e+00 : f32
    %158 = vector.broadcast %cst_142 : f32 to vector<4x5xf32>
    %159 = arith.subf %158, %153 : vector<4x5xf32>
    %160 = arith.mulf %159, %157 : vector<4x5xf32>
    %cst_143 = arith.constant dense<0.000000e+00> : vector<4x5xf32>
    %161 = tpu.matmul %106, %108, %cst_143 {dimension_numbers = #tpu.dot_dimension_numbers<[1], [0], [0], [1], [0, 0, 1, 1], [], []>} : vector<4x5xf32>, vector<5x5xf32>, vector<4x5xf32> -> vector<4x5xf32>
    %162 = vector.broadcast %120 : vector<1x5xf32> to vector<4x5xf32>
    %163 = arith.addf %161, %162 : vector<4x5xf32>
    %cst_144 = arith.constant dense<0.000000e+00> : vector<4x5xf32>
    %164 = tpu.matmul %106, %110, %cst_144 {dimension_numbers = #tpu.dot_dimension_numbers<[1], [0], [0], [1], [0, 0, 1, 1], [], []>} : vector<4x5xf32>, vector<5x5xf32>, vector<4x5xf32> -> vector<4x5xf32>
    %165 = vector.broadcast %122 : vector<1x5xf32> to vector<4x5xf32>
    %166 = arith.addf %164, %165 : vector<4x5xf32>
    %cst_145 = arith.constant dense<0.000000e+00> : vector<4x5xf32>
    %167 = tpu.matmul %106, %112, %cst_145 {dimension_numbers = #tpu.dot_dimension_numbers<[1], [0], [0], [1], [0, 0, 1, 1], [], []>} : vector<4x5xf32>, vector<5x5xf32>, vector<4x5xf32> -> vector<4x5xf32>
    %168 = vector.broadcast %124 : vector<1x5xf32> to vector<4x5xf32>
    %169 = arith.addf %167, %168 : vector<4x5xf32>
    %cst_146 = arith.constant dense<0.000000e+00> : vector<4x5xf32>
    %170 = tpu.matmul %160, %114, %cst_146 {dimension_numbers = #tpu.dot_dimension_numbers<[1], [0], [0], [1], [0, 0, 1, 1], [], []>} : vector<4x5xf32>, vector<5x5xf32>, vector<4x5xf32> -> vector<4x5xf32>
    %171 = vector.broadcast %126 : vector<1x5xf32> to vector<4x5xf32>
    %172 = arith.addf %170, %171 : vector<4x5xf32>
    %cst_147 = arith.constant dense<0.000000e+00> : vector<4x5xf32>
    %173 = tpu.matmul %160, %116, %cst_147 {dimension_numbers = #tpu.dot_dimension_numbers<[1], [0], [0], [1], [0, 0, 1, 1], [], []>} : vector<4x5xf32>, vector<5x5xf32>, vector<4x5xf32> -> vector<4x5xf32>
    %174 = vector.broadcast %128 : vector<1x5xf32> to vector<4x5xf32>
    %175 = arith.addf %173, %174 : vector<4x5xf32>
    %cst_148 = arith.constant dense<0.000000e+00> : vector<4x5xf32>
    %176 = tpu.matmul %160, %118, %cst_148 {dimension_numbers = #tpu.dot_dimension_numbers<[1], [0], [0], [1], [0, 0, 1, 1], [], []>} : vector<4x5xf32>, vector<5x5xf32>, vector<4x5xf32> -> vector<4x5xf32>
    %177 = vector.broadcast %130 : vector<1x5xf32> to vector<4x5xf32>
    %178 = arith.addf %176, %177 : vector<4x5xf32>
    %179 = arith.addf %163, %172 : vector<4x5xf32>
    %180 = arith.negf %179 : vector<4x5xf32>
    %181 = math.exp %180 : vector<4x5xf32>
    %cst_149 = arith.constant 1.000000e+00 : f32
    %182 = vector.broadcast %cst_149 : f32 to vector<4x5xf32>
    %183 = arith.addf %182, %181 : vector<4x5xf32>
    %184 = arith.divf %182, %183 : vector<4x5xf32>
    %185 = arith.addf %166, %175 : vector<4x5xf32>
    %186 = arith.negf %185 : vector<4x5xf32>
    %187 = math.exp %186 : vector<4x5xf32>
    %cst_150 = arith.constant 1.000000e+00 : f32
    %188 = vector.broadcast %cst_150 : f32 to vector<4x5xf32>
    %189 = arith.addf %188, %187 : vector<4x5xf32>
    %190 = arith.divf %188, %189 : vector<4x5xf32>
    %191 = arith.mulf %184, %178 : vector<4x5xf32>
    %192 = arith.addf %169, %191 : vector<4x5xf32>
    %193 = math.tanh %192 : vector<4x5xf32>
    %cst_151 = arith.constant 1.000000e+00 : f32
    %194 = vector.broadcast %cst_151 : f32 to vector<4x5xf32>
    %195 = arith.subf %194, %190 : vector<4x5xf32>
    %196 = arith.mulf %195, %193 : vector<4x5xf32>
    %197 = arith.mulf %190, %160 : vector<4x5xf32>
    %198 = arith.addf %196, %197 : vector<4x5xf32>
    %c1_152 = arith.constant 1 : index
    %c0_153 = arith.constant 0 : index
    %c0_154 = arith.constant 0 : index
    %c0_155 = arith.constant 0 : index
    %199 = vector.load %arg7[%c1_152, %c0_153, %c0_154, %c0_155] : memref<2x3x5x5xf32, #tpu.memory_space<vmem>>, vector<1x1x5x5xf32>
    %200 = vector.shape_cast %199 : vector<1x1x5x5xf32> to vector<5x5xf32>
    %c1_156 = arith.constant 1 : index
    %c1_157 = arith.constant 1 : index
    %c0_158 = arith.constant 0 : index
    %c0_159 = arith.constant 0 : index
    %201 = vector.load %arg7[%c1_156, %c1_157, %c0_158, %c0_159] : memref<2x3x5x5xf32, #tpu.memory_space<vmem>>, vector<1x1x5x5xf32>
    %202 = vector.shape_cast %201 : vector<1x1x5x5xf32> to vector<5x5xf32>
    %c1_160 = arith.constant 1 : index
    %c2_161 = arith.constant 2 : index
    %c0_162 = arith.constant 0 : index
    %c0_163 = arith.constant 0 : index
    %203 = vector.load %arg7[%c1_160, %c2_161, %c0_162, %c0_163] : memref<2x3x5x5xf32, #tpu.memory_space<vmem>>, vector<1x1x5x5xf32>
    %204 = vector.shape_cast %203 : vector<1x1x5x5xf32> to vector<5x5xf32>
    %c1_164 = arith.constant 1 : index
    %c0_165 = arith.constant 0 : index
    %c0_166 = arith.constant 0 : index
    %c0_167 = arith.constant 0 : index
    %205 = vector.load %arg8[%c1_164, %c0_165, %c0_166, %c0_167] : memref<2x3x5x5xf32, #tpu.memory_space<vmem>>, vector<1x1x5x5xf32>
    %206 = vector.shape_cast %205 : vector<1x1x5x5xf32> to vector<5x5xf32>
    %c1_168 = arith.constant 1 : index
    %c1_169 = arith.constant 1 : index
    %c0_170 = arith.constant 0 : index
    %c0_171 = arith.constant 0 : index
    %207 = vector.load %arg8[%c1_168, %c1_169, %c0_170, %c0_171] : memref<2x3x5x5xf32, #tpu.memory_space<vmem>>, vector<1x1x5x5xf32>
    %208 = vector.shape_cast %207 : vector<1x1x5x5xf32> to vector<5x5xf32>
    %c1_172 = arith.constant 1 : index
    %c2_173 = arith.constant 2 : index
    %c0_174 = arith.constant 0 : index
    %c0_175 = arith.constant 0 : index
    %209 = vector.load %arg8[%c1_172, %c2_173, %c0_174, %c0_175] : memref<2x3x5x5xf32, #tpu.memory_space<vmem>>, vector<1x1x5x5xf32>
    %210 = vector.shape_cast %209 : vector<1x1x5x5xf32> to vector<5x5xf32>
    %c1_176 = arith.constant 1 : index
    %c0_177 = arith.constant 0 : index
    %c0_178 = arith.constant 0 : index
    %c0_179 = arith.constant 0 : index
    %211 = vector.load %arg9[%c1_176, %c0_177, %c0_178, %c0_179] : memref<2x3x1x5xf32, #tpu.memory_space<vmem>>, vector<1x1x1x5xf32>
    %212 = vector.shape_cast %211 : vector<1x1x1x5xf32> to vector<1x5xf32>
    %c1_180 = arith.constant 1 : index
    %c1_181 = arith.constant 1 : index
    %c0_182 = arith.constant 0 : index
    %c0_183 = arith.constant 0 : index
    %213 = vector.load %arg9[%c1_180, %c1_181, %c0_182, %c0_183] : memref<2x3x1x5xf32, #tpu.memory_space<vmem>>, vector<1x1x1x5xf32>
    %214 = vector.shape_cast %213 : vector<1x1x1x5xf32> to vector<1x5xf32>
    %c1_184 = arith.constant 1 : index
    %c2_185 = arith.constant 2 : index
    %c0_186 = arith.constant 0 : index
    %c0_187 = arith.constant 0 : index
    %215 = vector.load %arg9[%c1_184, %c2_185, %c0_186, %c0_187] : memref<2x3x1x5xf32, #tpu.memory_space<vmem>>, vector<1x1x1x5xf32>
    %216 = vector.shape_cast %215 : vector<1x1x1x5xf32> to vector<1x5xf32>
    %c1_188 = arith.constant 1 : index
    %c0_189 = arith.constant 0 : index
    %c0_190 = arith.constant 0 : index
    %c0_191 = arith.constant 0 : index
    %217 = vector.load %arg10[%c1_188, %c0_189, %c0_190, %c0_191] : memref<2x3x1x5xf32, #tpu.memory_space<vmem>>, vector<1x1x1x5xf32>
    %218 = vector.shape_cast %217 : vector<1x1x1x5xf32> to vector<1x5xf32>
    %c1_192 = arith.constant 1 : index
    %c1_193 = arith.constant 1 : index
    %c0_194 = arith.constant 0 : index
    %c0_195 = arith.constant 0 : index
    %219 = vector.load %arg10[%c1_192, %c1_193, %c0_194, %c0_195] : memref<2x3x1x5xf32, #tpu.memory_space<vmem>>, vector<1x1x1x5xf32>
    %220 = vector.shape_cast %219 : vector<1x1x1x5xf32> to vector<1x5xf32>
    %c1_196 = arith.constant 1 : index
    %c2_197 = arith.constant 2 : index
    %c0_198 = arith.constant 0 : index
    %c0_199 = arith.constant 0 : index
    %221 = vector.load %arg10[%c1_196, %c2_197, %c0_198, %c0_199] : memref<2x3x1x5xf32, #tpu.memory_space<vmem>>, vector<1x1x1x5xf32>
    %222 = vector.shape_cast %221 : vector<1x1x1x5xf32> to vector<1x5xf32>
    %cst_200 = arith.constant dense<0.000000e+00> : vector<4x5xf32>
    %223 = tpu.matmul %106, %200, %cst_200 {dimension_numbers = #tpu.dot_dimension_numbers<[1], [0], [0], [1], [0, 0, 1, 1], [], []>} : vector<4x5xf32>, vector<5x5xf32>, vector<4x5xf32> -> vector<4x5xf32>
    %224 = vector.broadcast %212 : vector<1x5xf32> to vector<4x5xf32>
    %225 = arith.addf %223, %224 : vector<4x5xf32>
    %cst_201 = arith.constant dense<0.000000e+00> : vector<4x5xf32>
    %226 = tpu.matmul %106, %202, %cst_201 {dimension_numbers = #tpu.dot_dimension_numbers<[1], [0], [0], [1], [0, 0, 1, 1], [], []>} : vector<4x5xf32>, vector<5x5xf32>, vector<4x5xf32> -> vector<4x5xf32>
    %227 = vector.broadcast %214 : vector<1x5xf32> to vector<4x5xf32>
    %228 = arith.addf %226, %227 : vector<4x5xf32>
    %cst_202 = arith.constant dense<0.000000e+00> : vector<4x5xf32>
    %229 = tpu.matmul %106, %204, %cst_202 {dimension_numbers = #tpu.dot_dimension_numbers<[1], [0], [0], [1], [0, 0, 1, 1], [], []>} : vector<4x5xf32>, vector<5x5xf32>, vector<4x5xf32> -> vector<4x5xf32>
    %230 = vector.broadcast %216 : vector<1x5xf32> to vector<4x5xf32>
    %231 = arith.addf %229, %230 : vector<4x5xf32>
    %232 = vector.broadcast %218 : vector<1x5xf32> to vector<4x5xf32>
    %233 = arith.addf %225, %232 : vector<4x5xf32>
    %234 = arith.negf %233 : vector<4x5xf32>
    %235 = math.exp %234 : vector<4x5xf32>
    %cst_203 = arith.constant 1.000000e+00 : f32
    %236 = vector.broadcast %cst_203 : f32 to vector<4x5xf32>
    %237 = arith.addf %236, %235 : vector<4x5xf32>
    %238 = arith.divf %236, %237 : vector<4x5xf32>
    %239 = vector.broadcast %220 : vector<1x5xf32> to vector<4x5xf32>
    %240 = arith.addf %228, %239 : vector<4x5xf32>
    %241 = arith.negf %240 : vector<4x5xf32>
    %242 = math.exp %241 : vector<4x5xf32>
    %cst_204 = arith.constant 1.000000e+00 : f32
    %243 = vector.broadcast %cst_204 : f32 to vector<4x5xf32>
    %244 = arith.addf %243, %242 : vector<4x5xf32>
    %245 = arith.divf %243, %244 : vector<4x5xf32>
    %246 = vector.broadcast %222 : vector<1x5xf32> to vector<4x5xf32>
    %247 = arith.mulf %238, %246 : vector<4x5xf32>
    %248 = arith.addf %231, %247 : vector<4x5xf32>
    %249 = math.tanh %248 : vector<4x5xf32>
    %cst_205 = arith.constant 1.000000e+00 : f32
    %250 = vector.broadcast %cst_205 : f32 to vector<4x5xf32>
    %251 = arith.subf %250, %245 : vector<4x5xf32>
    %252 = arith.mulf %251, %249 : vector<4x5xf32>
    %cst_206 = arith.constant dense<0.000000e+00> : vector<4x5xf32>
    %253 = tpu.matmul %105, %200, %cst_206 {dimension_numbers = #tpu.dot_dimension_numbers<[1], [0], [0], [1], [0, 0, 1, 1], [], []>} : vector<4x5xf32>, vector<5x5xf32>, vector<4x5xf32> -> vector<4x5xf32>
    %254 = vector.broadcast %212 : vector<1x5xf32> to vector<4x5xf32>
    %255 = arith.addf %253, %254 : vector<4x5xf32>
    %cst_207 = arith.constant dense<0.000000e+00> : vector<4x5xf32>
    %256 = tpu.matmul %105, %202, %cst_207 {dimension_numbers = #tpu.dot_dimension_numbers<[1], [0], [0], [1], [0, 0, 1, 1], [], []>} : vector<4x5xf32>, vector<5x5xf32>, vector<4x5xf32> -> vector<4x5xf32>
    %257 = vector.broadcast %214 : vector<1x5xf32> to vector<4x5xf32>
    %258 = arith.addf %256, %257 : vector<4x5xf32>
    %cst_208 = arith.constant dense<0.000000e+00> : vector<4x5xf32>
    %259 = tpu.matmul %105, %204, %cst_208 {dimension_numbers = #tpu.dot_dimension_numbers<[1], [0], [0], [1], [0, 0, 1, 1], [], []>} : vector<4x5xf32>, vector<5x5xf32>, vector<4x5xf32> -> vector<4x5xf32>
    %260 = vector.broadcast %216 : vector<1x5xf32> to vector<4x5xf32>
    %261 = arith.addf %259, %260 : vector<4x5xf32>
    %cst_209 = arith.constant dense<0.000000e+00> : vector<4x5xf32>
    %262 = tpu.matmul %252, %206, %cst_209 {dimension_numbers = #tpu.dot_dimension_numbers<[1], [0], [0], [1], [0, 0, 1, 1], [], []>} : vector<4x5xf32>, vector<5x5xf32>, vector<4x5xf32> -> vector<4x5xf32>
    %263 = vector.broadcast %218 : vector<1x5xf32> to vector<4x5xf32>
    %264 = arith.addf %262, %263 : vector<4x5xf32>
    %cst_210 = arith.constant dense<0.000000e+00> : vector<4x5xf32>
    %265 = tpu.matmul %252, %208, %cst_210 {dimension_numbers = #tpu.dot_dimension_numbers<[1], [0], [0], [1], [0, 0, 1, 1], [], []>} : vector<4x5xf32>, vector<5x5xf32>, vector<4x5xf32> -> vector<4x5xf32>
    %266 = vector.broadcast %220 : vector<1x5xf32> to vector<4x5xf32>
    %267 = arith.addf %265, %266 : vector<4x5xf32>
    %cst_211 = arith.constant dense<0.000000e+00> : vector<4x5xf32>
    %268 = tpu.matmul %252, %210, %cst_211 {dimension_numbers = #tpu.dot_dimension_numbers<[1], [0], [0], [1], [0, 0, 1, 1], [], []>} : vector<4x5xf32>, vector<5x5xf32>, vector<4x5xf32> -> vector<4x5xf32>
    %269 = vector.broadcast %222 : vector<1x5xf32> to vector<4x5xf32>
    %270 = arith.addf %268, %269 : vector<4x5xf32>
    %271 = arith.addf %255, %264 : vector<4x5xf32>
    %272 = arith.negf %271 : vector<4x5xf32>
    %273 = math.exp %272 : vector<4x5xf32>
    %cst_212 = arith.constant 1.000000e+00 : f32
    %274 = vector.broadcast %cst_212 : f32 to vector<4x5xf32>
    %275 = arith.addf %274, %273 : vector<4x5xf32>
    %276 = arith.divf %274, %275 : vector<4x5xf32>
    %277 = arith.addf %258, %267 : vector<4x5xf32>
    %278 = arith.negf %277 : vector<4x5xf32>
    %279 = math.exp %278 : vector<4x5xf32>
    %cst_213 = arith.constant 1.000000e+00 : f32
    %280 = vector.broadcast %cst_213 : f32 to vector<4x5xf32>
    %281 = arith.addf %280, %279 : vector<4x5xf32>
    %282 = arith.divf %280, %281 : vector<4x5xf32>
    %283 = arith.mulf %276, %270 : vector<4x5xf32>
    %284 = arith.addf %261, %283 : vector<4x5xf32>
    %285 = math.tanh %284 : vector<4x5xf32>
    %cst_214 = arith.constant 1.000000e+00 : f32
    %286 = vector.broadcast %cst_214 : f32 to vector<4x5xf32>
    %287 = arith.subf %286, %282 : vector<4x5xf32>
    %288 = arith.mulf %287, %285 : vector<4x5xf32>
    %289 = arith.mulf %282, %252 : vector<4x5xf32>
    %290 = arith.addf %288, %289 : vector<4x5xf32>
    %cst_215 = arith.constant 0.00999999977 : f32
    %291 = vector.broadcast %cst_215 : f32 to vector<4x5xf32>
    %292 = arith.mulf %291, %198 : vector<4x5xf32>
    %293 = arith.maximumf %198, %292 : vector<4x5xf32>
    %cst_216 = arith.constant 0.00999999977 : f32
    %294 = vector.broadcast %cst_216 : f32 to vector<4x5xf32>
    %295 = arith.mulf %294, %290 : vector<4x5xf32>
    %296 = arith.maximumf %290, %295 : vector<4x5xf32>
    %cst_217 = arith.constant dense<0.000000e+00> : vector<4x5xf32>
    %297 = tpu.matmul %0, %293, %cst_217 {dimension_numbers = #tpu.dot_dimension_numbers<[1], [0], [0], [1], [0, 0, 1, 1], [], []>} : vector<4x4xf32>, vector<4x5xf32>, vector<4x5xf32> -> vector<4x5xf32>
    %cst_218 = arith.constant dense<0.000000e+00> : vector<4x5xf32>
    %298 = tpu.matmul %0, %296, %cst_218 {dimension_numbers = #tpu.dot_dimension_numbers<[1], [0], [0], [1], [0, 0, 1, 1], [], []>} : vector<4x4xf32>, vector<4x5xf32>, vector<4x5xf32> -> vector<4x5xf32>
    %c0_219 = arith.constant 0 : index
    %c0_220 = arith.constant 0 : index
    %c0_221 = arith.constant 0 : index
    %c0_222 = arith.constant 0 : index
    %299 = vector.load %arg11[%c0_219, %c0_220, %c0_221, %c0_222] : memref<2x3x5x5xf32, #tpu.memory_space<vmem>>, vector<1x1x5x5xf32>
    %300 = vector.shape_cast %299 : vector<1x1x5x5xf32> to vector<5x5xf32>
    %c0_223 = arith.constant 0 : index
    %c1_224 = arith.constant 1 : index
    %c0_225 = arith.constant 0 : index
    %c0_226 = arith.constant 0 : index
    %301 = vector.load %arg11[%c0_223, %c1_224, %c0_225, %c0_226] : memref<2x3x5x5xf32, #tpu.memory_space<vmem>>, vector<1x1x5x5xf32>
    %302 = vector.shape_cast %301 : vector<1x1x5x5xf32> to vector<5x5xf32>
    %c0_227 = arith.constant 0 : index
    %c2_228 = arith.constant 2 : index
    %c0_229 = arith.constant 0 : index
    %c0_230 = arith.constant 0 : index
    %303 = vector.load %arg11[%c0_227, %c2_228, %c0_229, %c0_230] : memref<2x3x5x5xf32, #tpu.memory_space<vmem>>, vector<1x1x5x5xf32>
    %304 = vector.shape_cast %303 : vector<1x1x5x5xf32> to vector<5x5xf32>
    %c0_231 = arith.constant 0 : index
    %c0_232 = arith.constant 0 : index
    %c0_233 = arith.constant 0 : index
    %c0_234 = arith.constant 0 : index
    %305 = vector.load %arg12[%c0_231, %c0_232, %c0_233, %c0_234] : memref<2x3x5x5xf32, #tpu.memory_space<vmem>>, vector<1x1x5x5xf32>
    %306 = vector.shape_cast %305 : vector<1x1x5x5xf32> to vector<5x5xf32>
    %c0_235 = arith.constant 0 : index
    %c1_236 = arith.constant 1 : index
    %c0_237 = arith.constant 0 : index
    %c0_238 = arith.constant 0 : index
    %307 = vector.load %arg12[%c0_235, %c1_236, %c0_237, %c0_238] : memref<2x3x5x5xf32, #tpu.memory_space<vmem>>, vector<1x1x5x5xf32>
    %308 = vector.shape_cast %307 : vector<1x1x5x5xf32> to vector<5x5xf32>
    %c0_239 = arith.constant 0 : index
    %c2_240 = arith.constant 2 : index
    %c0_241 = arith.constant 0 : index
    %c0_242 = arith.constant 0 : index
    %309 = vector.load %arg12[%c0_239, %c2_240, %c0_241, %c0_242] : memref<2x3x5x5xf32, #tpu.memory_space<vmem>>, vector<1x1x5x5xf32>
    %310 = vector.shape_cast %309 : vector<1x1x5x5xf32> to vector<5x5xf32>
    %c0_243 = arith.constant 0 : index
    %c0_244 = arith.constant 0 : index
    %c0_245 = arith.constant 0 : index
    %c0_246 = arith.constant 0 : index
    %311 = vector.load %arg13[%c0_243, %c0_244, %c0_245, %c0_246] : memref<2x3x1x5xf32, #tpu.memory_space<vmem>>, vector<1x1x1x5xf32>
    %312 = vector.shape_cast %311 : vector<1x1x1x5xf32> to vector<1x5xf32>
    %c0_247 = arith.constant 0 : index
    %c1_248 = arith.constant 1 : index
    %c0_249 = arith.constant 0 : index
    %c0_250 = arith.constant 0 : index
    %313 = vector.load %arg13[%c0_247, %c1_248, %c0_249, %c0_250] : memref<2x3x1x5xf32, #tpu.memory_space<vmem>>, vector<1x1x1x5xf32>
    %314 = vector.shape_cast %313 : vector<1x1x1x5xf32> to vector<1x5xf32>
    %c0_251 = arith.constant 0 : index
    %c2_252 = arith.constant 2 : index
    %c0_253 = arith.constant 0 : index
    %c0_254 = arith.constant 0 : index
    %315 = vector.load %arg13[%c0_251, %c2_252, %c0_253, %c0_254] : memref<2x3x1x5xf32, #tpu.memory_space<vmem>>, vector<1x1x1x5xf32>
    %316 = vector.shape_cast %315 : vector<1x1x1x5xf32> to vector<1x5xf32>
    %c0_255 = arith.constant 0 : index
    %c0_256 = arith.constant 0 : index
    %c0_257 = arith.constant 0 : index
    %c0_258 = arith.constant 0 : index
    %317 = vector.load %arg14[%c0_255, %c0_256, %c0_257, %c0_258] : memref<2x3x1x5xf32, #tpu.memory_space<vmem>>, vector<1x1x1x5xf32>
    %318 = vector.shape_cast %317 : vector<1x1x1x5xf32> to vector<1x5xf32>
    %c0_259 = arith.constant 0 : index
    %c1_260 = arith.constant 1 : index
    %c0_261 = arith.constant 0 : index
    %c0_262 = arith.constant 0 : index
    %319 = vector.load %arg14[%c0_259, %c1_260, %c0_261, %c0_262] : memref<2x3x1x5xf32, #tpu.memory_space<vmem>>, vector<1x1x1x5xf32>
    %320 = vector.shape_cast %319 : vector<1x1x1x5xf32> to vector<1x5xf32>
    %c0_263 = arith.constant 0 : index
    %c2_264 = arith.constant 2 : index
    %c0_265 = arith.constant 0 : index
    %c0_266 = arith.constant 0 : index
    %321 = vector.load %arg14[%c0_263, %c2_264, %c0_265, %c0_266] : memref<2x3x1x5xf32, #tpu.memory_space<vmem>>, vector<1x1x1x5xf32>
    %322 = vector.shape_cast %321 : vector<1x1x1x5xf32> to vector<1x5xf32>
    %cst_267 = arith.constant dense<0.000000e+00> : vector<4x5xf32>
    %323 = tpu.matmul %297, %300, %cst_267 {dimension_numbers = #tpu.dot_dimension_numbers<[1], [0], [0], [1], [0, 0, 1, 1], [], []>} : vector<4x5xf32>, vector<5x5xf32>, vector<4x5xf32> -> vector<4x5xf32>
    %324 = vector.broadcast %312 : vector<1x5xf32> to vector<4x5xf32>
    %325 = arith.addf %323, %324 : vector<4x5xf32>
    %cst_268 = arith.constant dense<0.000000e+00> : vector<4x5xf32>
    %326 = tpu.matmul %297, %302, %cst_268 {dimension_numbers = #tpu.dot_dimension_numbers<[1], [0], [0], [1], [0, 0, 1, 1], [], []>} : vector<4x5xf32>, vector<5x5xf32>, vector<4x5xf32> -> vector<4x5xf32>
    %327 = vector.broadcast %314 : vector<1x5xf32> to vector<4x5xf32>
    %328 = arith.addf %326, %327 : vector<4x5xf32>
    %cst_269 = arith.constant dense<0.000000e+00> : vector<4x5xf32>
    %329 = tpu.matmul %297, %304, %cst_269 {dimension_numbers = #tpu.dot_dimension_numbers<[1], [0], [0], [1], [0, 0, 1, 1], [], []>} : vector<4x5xf32>, vector<5x5xf32>, vector<4x5xf32> -> vector<4x5xf32>
    %330 = vector.broadcast %316 : vector<1x5xf32> to vector<4x5xf32>
    %331 = arith.addf %329, %330 : vector<4x5xf32>
    %332 = vector.broadcast %318 : vector<1x5xf32> to vector<4x5xf32>
    %333 = arith.addf %325, %332 : vector<4x5xf32>
    %334 = arith.negf %333 : vector<4x5xf32>
    %335 = math.exp %334 : vector<4x5xf32>
    %cst_270 = arith.constant 1.000000e+00 : f32
    %336 = vector.broadcast %cst_270 : f32 to vector<4x5xf32>
    %337 = arith.addf %336, %335 : vector<4x5xf32>
    %338 = arith.divf %336, %337 : vector<4x5xf32>
    %339 = vector.broadcast %320 : vector<1x5xf32> to vector<4x5xf32>
    %340 = arith.addf %328, %339 : vector<4x5xf32>
    %341 = arith.negf %340 : vector<4x5xf32>
    %342 = math.exp %341 : vector<4x5xf32>
    %cst_271 = arith.constant 1.000000e+00 : f32
    %343 = vector.broadcast %cst_271 : f32 to vector<4x5xf32>
    %344 = arith.addf %343, %342 : vector<4x5xf32>
    %345 = arith.divf %343, %344 : vector<4x5xf32>
    %346 = vector.broadcast %322 : vector<1x5xf32> to vector<4x5xf32>
    %347 = arith.mulf %338, %346 : vector<4x5xf32>
    %348 = arith.addf %331, %347 : vector<4x5xf32>
    %349 = math.tanh %348 : vector<4x5xf32>
    %cst_272 = arith.constant 1.000000e+00 : f32
    %350 = vector.broadcast %cst_272 : f32 to vector<4x5xf32>
    %351 = arith.subf %350, %345 : vector<4x5xf32>
    %352 = arith.mulf %351, %349 : vector<4x5xf32>
    %cst_273 = arith.constant dense<0.000000e+00> : vector<4x5xf32>
    %353 = tpu.matmul %298, %300, %cst_273 {dimension_numbers = #tpu.dot_dimension_numbers<[1], [0], [0], [1], [0, 0, 1, 1], [], []>} : vector<4x5xf32>, vector<5x5xf32>, vector<4x5xf32> -> vector<4x5xf32>
    %354 = vector.broadcast %312 : vector<1x5xf32> to vector<4x5xf32>
    %355 = arith.addf %353, %354 : vector<4x5xf32>
    %cst_274 = arith.constant dense<0.000000e+00> : vector<4x5xf32>
    %356 = tpu.matmul %298, %302, %cst_274 {dimension_numbers = #tpu.dot_dimension_numbers<[1], [0], [0], [1], [0, 0, 1, 1], [], []>} : vector<4x5xf32>, vector<5x5xf32>, vector<4x5xf32> -> vector<4x5xf32>
    %357 = vector.broadcast %314 : vector<1x5xf32> to vector<4x5xf32>
    %358 = arith.addf %356, %357 : vector<4x5xf32>
    %cst_275 = arith.constant dense<0.000000e+00> : vector<4x5xf32>
    %359 = tpu.matmul %298, %304, %cst_275 {dimension_numbers = #tpu.dot_dimension_numbers<[1], [0], [0], [1], [0, 0, 1, 1], [], []>} : vector<4x5xf32>, vector<5x5xf32>, vector<4x5xf32> -> vector<4x5xf32>
    %360 = vector.broadcast %316 : vector<1x5xf32> to vector<4x5xf32>
    %361 = arith.addf %359, %360 : vector<4x5xf32>
    %cst_276 = arith.constant dense<0.000000e+00> : vector<4x5xf32>
    %362 = tpu.matmul %352, %306, %cst_276 {dimension_numbers = #tpu.dot_dimension_numbers<[1], [0], [0], [1], [0, 0, 1, 1], [], []>} : vector<4x5xf32>, vector<5x5xf32>, vector<4x5xf32> -> vector<4x5xf32>
    %363 = vector.broadcast %318 : vector<1x5xf32> to vector<4x5xf32>
    %364 = arith.addf %362, %363 : vector<4x5xf32>
    %cst_277 = arith.constant dense<0.000000e+00> : vector<4x5xf32>
    %365 = tpu.matmul %352, %308, %cst_277 {dimension_numbers = #tpu.dot_dimension_numbers<[1], [0], [0], [1], [0, 0, 1, 1], [], []>} : vector<4x5xf32>, vector<5x5xf32>, vector<4x5xf32> -> vector<4x5xf32>
    %366 = vector.broadcast %320 : vector<1x5xf32> to vector<4x5xf32>
    %367 = arith.addf %365, %366 : vector<4x5xf32>
    %cst_278 = arith.constant dense<0.000000e+00> : vector<4x5xf32>
    %368 = tpu.matmul %352, %310, %cst_278 {dimension_numbers = #tpu.dot_dimension_numbers<[1], [0], [0], [1], [0, 0, 1, 1], [], []>} : vector<4x5xf32>, vector<5x5xf32>, vector<4x5xf32> -> vector<4x5xf32>
    %369 = vector.broadcast %322 : vector<1x5xf32> to vector<4x5xf32>
    %370 = arith.addf %368, %369 : vector<4x5xf32>
    %371 = arith.addf %355, %364 : vector<4x5xf32>
    %372 = arith.negf %371 : vector<4x5xf32>
    %373 = math.exp %372 : vector<4x5xf32>
    %cst_279 = arith.constant 1.000000e+00 : f32
    %374 = vector.broadcast %cst_279 : f32 to vector<4x5xf32>
    %375 = arith.addf %374, %373 : vector<4x5xf32>
    %376 = arith.divf %374, %375 : vector<4x5xf32>
    %377 = arith.addf %358, %367 : vector<4x5xf32>
    %378 = arith.negf %377 : vector<4x5xf32>
    %379 = math.exp %378 : vector<4x5xf32>
    %cst_280 = arith.constant 1.000000e+00 : f32
    %380 = vector.broadcast %cst_280 : f32 to vector<4x5xf32>
    %381 = arith.addf %380, %379 : vector<4x5xf32>
    %382 = arith.divf %380, %381 : vector<4x5xf32>
    %383 = arith.mulf %376, %370 : vector<4x5xf32>
    %384 = arith.addf %361, %383 : vector<4x5xf32>
    %385 = math.tanh %384 : vector<4x5xf32>
    %cst_281 = arith.constant 1.000000e+00 : f32
    %386 = vector.broadcast %cst_281 : f32 to vector<4x5xf32>
    %387 = arith.subf %386, %382 : vector<4x5xf32>
    %388 = arith.mulf %387, %385 : vector<4x5xf32>
    %389 = arith.mulf %382, %352 : vector<4x5xf32>
    %390 = arith.addf %388, %389 : vector<4x5xf32>
    %c1_282 = arith.constant 1 : index
    %c0_283 = arith.constant 0 : index
    %c0_284 = arith.constant 0 : index
    %c0_285 = arith.constant 0 : index
    %391 = vector.load %arg11[%c1_282, %c0_283, %c0_284, %c0_285] : memref<2x3x5x5xf32, #tpu.memory_space<vmem>>, vector<1x1x5x5xf32>
    %392 = vector.shape_cast %391 : vector<1x1x5x5xf32> to vector<5x5xf32>
    %c1_286 = arith.constant 1 : index
    %c1_287 = arith.constant 1 : index
    %c0_288 = arith.constant 0 : index
    %c0_289 = arith.constant 0 : index
    %393 = vector.load %arg11[%c1_286, %c1_287, %c0_288, %c0_289] : memref<2x3x5x5xf32, #tpu.memory_space<vmem>>, vector<1x1x5x5xf32>
    %394 = vector.shape_cast %393 : vector<1x1x5x5xf32> to vector<5x5xf32>
    %c1_290 = arith.constant 1 : index
    %c2_291 = arith.constant 2 : index
    %c0_292 = arith.constant 0 : index
    %c0_293 = arith.constant 0 : index
    %395 = vector.load %arg11[%c1_290, %c2_291, %c0_292, %c0_293] : memref<2x3x5x5xf32, #tpu.memory_space<vmem>>, vector<1x1x5x5xf32>
    %396 = vector.shape_cast %395 : vector<1x1x5x5xf32> to vector<5x5xf32>
    %c1_294 = arith.constant 1 : index
    %c0_295 = arith.constant 0 : index
    %c0_296 = arith.constant 0 : index
    %c0_297 = arith.constant 0 : index
    %397 = vector.load %arg12[%c1_294, %c0_295, %c0_296, %c0_297] : memref<2x3x5x5xf32, #tpu.memory_space<vmem>>, vector<1x1x5x5xf32>
    %398 = vector.shape_cast %397 : vector<1x1x5x5xf32> to vector<5x5xf32>
    %c1_298 = arith.constant 1 : index
    %c1_299 = arith.constant 1 : index
    %c0_300 = arith.constant 0 : index
    %c0_301 = arith.constant 0 : index
    %399 = vector.load %arg12[%c1_298, %c1_299, %c0_300, %c0_301] : memref<2x3x5x5xf32, #tpu.memory_space<vmem>>, vector<1x1x5x5xf32>
    %400 = vector.shape_cast %399 : vector<1x1x5x5xf32> to vector<5x5xf32>
    %c1_302 = arith.constant 1 : index
    %c2_303 = arith.constant 2 : index
    %c0_304 = arith.constant 0 : index
    %c0_305 = arith.constant 0 : index
    %401 = vector.load %arg12[%c1_302, %c2_303, %c0_304, %c0_305] : memref<2x3x5x5xf32, #tpu.memory_space<vmem>>, vector<1x1x5x5xf32>
    %402 = vector.shape_cast %401 : vector<1x1x5x5xf32> to vector<5x5xf32>
    %c1_306 = arith.constant 1 : index
    %c0_307 = arith.constant 0 : index
    %c0_308 = arith.constant 0 : index
    %c0_309 = arith.constant 0 : index
    %403 = vector.load %arg13[%c1_306, %c0_307, %c0_308, %c0_309] : memref<2x3x1x5xf32, #tpu.memory_space<vmem>>, vector<1x1x1x5xf32>
    %404 = vector.shape_cast %403 : vector<1x1x1x5xf32> to vector<1x5xf32>
    %c1_310 = arith.constant 1 : index
    %c1_311 = arith.constant 1 : index
    %c0_312 = arith.constant 0 : index
    %c0_313 = arith.constant 0 : index
    %405 = vector.load %arg13[%c1_310, %c1_311, %c0_312, %c0_313] : memref<2x3x1x5xf32, #tpu.memory_space<vmem>>, vector<1x1x1x5xf32>
    %406 = vector.shape_cast %405 : vector<1x1x1x5xf32> to vector<1x5xf32>
    %c1_314 = arith.constant 1 : index
    %c2_315 = arith.constant 2 : index
    %c0_316 = arith.constant 0 : index
    %c0_317 = arith.constant 0 : index
    %407 = vector.load %arg13[%c1_314, %c2_315, %c0_316, %c0_317] : memref<2x3x1x5xf32, #tpu.memory_space<vmem>>, vector<1x1x1x5xf32>
    %408 = vector.shape_cast %407 : vector<1x1x1x5xf32> to vector<1x5xf32>
    %c1_318 = arith.constant 1 : index
    %c0_319 = arith.constant 0 : index
    %c0_320 = arith.constant 0 : index
    %c0_321 = arith.constant 0 : index
    %409 = vector.load %arg14[%c1_318, %c0_319, %c0_320, %c0_321] : memref<2x3x1x5xf32, #tpu.memory_space<vmem>>, vector<1x1x1x5xf32>
    %410 = vector.shape_cast %409 : vector<1x1x1x5xf32> to vector<1x5xf32>
    %c1_322 = arith.constant 1 : index
    %c1_323 = arith.constant 1 : index
    %c0_324 = arith.constant 0 : index
    %c0_325 = arith.constant 0 : index
    %411 = vector.load %arg14[%c1_322, %c1_323, %c0_324, %c0_325] : memref<2x3x1x5xf32, #tpu.memory_space<vmem>>, vector<1x1x1x5xf32>
    %412 = vector.shape_cast %411 : vector<1x1x1x5xf32> to vector<1x5xf32>
    %c1_326 = arith.constant 1 : index
    %c2_327 = arith.constant 2 : index
    %c0_328 = arith.constant 0 : index
    %c0_329 = arith.constant 0 : index
    %413 = vector.load %arg14[%c1_326, %c2_327, %c0_328, %c0_329] : memref<2x3x1x5xf32, #tpu.memory_space<vmem>>, vector<1x1x1x5xf32>
    %414 = vector.shape_cast %413 : vector<1x1x1x5xf32> to vector<1x5xf32>
    %cst_330 = arith.constant dense<0.000000e+00> : vector<4x5xf32>
    %415 = tpu.matmul %298, %392, %cst_330 {dimension_numbers = #tpu.dot_dimension_numbers<[1], [0], [0], [1], [0, 0, 1, 1], [], []>} : vector<4x5xf32>, vector<5x5xf32>, vector<4x5xf32> -> vector<4x5xf32>
    %416 = vector.broadcast %404 : vector<1x5xf32> to vector<4x5xf32>
    %417 = arith.addf %415, %416 : vector<4x5xf32>
    %cst_331 = arith.constant dense<0.000000e+00> : vector<4x5xf32>
    %418 = tpu.matmul %298, %394, %cst_331 {dimension_numbers = #tpu.dot_dimension_numbers<[1], [0], [0], [1], [0, 0, 1, 1], [], []>} : vector<4x5xf32>, vector<5x5xf32>, vector<4x5xf32> -> vector<4x5xf32>
    %419 = vector.broadcast %406 : vector<1x5xf32> to vector<4x5xf32>
    %420 = arith.addf %418, %419 : vector<4x5xf32>
    %cst_332 = arith.constant dense<0.000000e+00> : vector<4x5xf32>
    %421 = tpu.matmul %298, %396, %cst_332 {dimension_numbers = #tpu.dot_dimension_numbers<[1], [0], [0], [1], [0, 0, 1, 1], [], []>} : vector<4x5xf32>, vector<5x5xf32>, vector<4x5xf32> -> vector<4x5xf32>
    %422 = vector.broadcast %408 : vector<1x5xf32> to vector<4x5xf32>
    %423 = arith.addf %421, %422 : vector<4x5xf32>
    %424 = vector.broadcast %410 : vector<1x5xf32> to vector<4x5xf32>
    %425 = arith.addf %417, %424 : vector<4x5xf32>
    %426 = arith.negf %425 : vector<4x5xf32>
    %427 = math.exp %426 : vector<4x5xf32>
    %cst_333 = arith.constant 1.000000e+00 : f32
    %428 = vector.broadcast %cst_333 : f32 to vector<4x5xf32>
    %429 = arith.addf %428, %427 : vector<4x5xf32>
    %430 = arith.divf %428, %429 : vector<4x5xf32>
    %431 = vector.broadcast %412 : vector<1x5xf32> to vector<4x5xf32>
    %432 = arith.addf %420, %431 : vector<4x5xf32>
    %433 = arith.negf %432 : vector<4x5xf32>
    %434 = math.exp %433 : vector<4x5xf32>
    %cst_334 = arith.constant 1.000000e+00 : f32
    %435 = vector.broadcast %cst_334 : f32 to vector<4x5xf32>
    %436 = arith.addf %435, %434 : vector<4x5xf32>
    %437 = arith.divf %435, %436 : vector<4x5xf32>
    %438 = vector.broadcast %414 : vector<1x5xf32> to vector<4x5xf32>
    %439 = arith.mulf %430, %438 : vector<4x5xf32>
    %440 = arith.addf %423, %439 : vector<4x5xf32>
    %441 = math.tanh %440 : vector<4x5xf32>
    %cst_335 = arith.constant 1.000000e+00 : f32
    %442 = vector.broadcast %cst_335 : f32 to vector<4x5xf32>
    %443 = arith.subf %442, %437 : vector<4x5xf32>
    %444 = arith.mulf %443, %441 : vector<4x5xf32>
    %cst_336 = arith.constant dense<0.000000e+00> : vector<4x5xf32>
    %445 = tpu.matmul %297, %392, %cst_336 {dimension_numbers = #tpu.dot_dimension_numbers<[1], [0], [0], [1], [0, 0, 1, 1], [], []>} : vector<4x5xf32>, vector<5x5xf32>, vector<4x5xf32> -> vector<4x5xf32>
    %446 = vector.broadcast %404 : vector<1x5xf32> to vector<4x5xf32>
    %447 = arith.addf %445, %446 : vector<4x5xf32>
    %cst_337 = arith.constant dense<0.000000e+00> : vector<4x5xf32>
    %448 = tpu.matmul %297, %394, %cst_337 {dimension_numbers = #tpu.dot_dimension_numbers<[1], [0], [0], [1], [0, 0, 1, 1], [], []>} : vector<4x5xf32>, vector<5x5xf32>, vector<4x5xf32> -> vector<4x5xf32>
    %449 = vector.broadcast %406 : vector<1x5xf32> to vector<4x5xf32>
    %450 = arith.addf %448, %449 : vector<4x5xf32>
    %cst_338 = arith.constant dense<0.000000e+00> : vector<4x5xf32>
    %451 = tpu.matmul %297, %396, %cst_338 {dimension_numbers = #tpu.dot_dimension_numbers<[1], [0], [0], [1], [0, 0, 1, 1], [], []>} : vector<4x5xf32>, vector<5x5xf32>, vector<4x5xf32> -> vector<4x5xf32>
    %452 = vector.broadcast %408 : vector<1x5xf32> to vector<4x5xf32>
    %453 = arith.addf %451, %452 : vector<4x5xf32>
    %cst_339 = arith.constant dense<0.000000e+00> : vector<4x5xf32>
    %454 = tpu.matmul %444, %398, %cst_339 {dimension_numbers = #tpu.dot_dimension_numbers<[1], [0], [0], [1], [0, 0, 1, 1], [], []>} : vector<4x5xf32>, vector<5x5xf32>, vector<4x5xf32> -> vector<4x5xf32>
    %455 = vector.broadcast %410 : vector<1x5xf32> to vector<4x5xf32>
    %456 = arith.addf %454, %455 : vector<4x5xf32>
    %cst_340 = arith.constant dense<0.000000e+00> : vector<4x5xf32>
    %457 = tpu.matmul %444, %400, %cst_340 {dimension_numbers = #tpu.dot_dimension_numbers<[1], [0], [0], [1], [0, 0, 1, 1], [], []>} : vector<4x5xf32>, vector<5x5xf32>, vector<4x5xf32> -> vector<4x5xf32>
    %458 = vector.broadcast %412 : vector<1x5xf32> to vector<4x5xf32>
    %459 = arith.addf %457, %458 : vector<4x5xf32>
    %cst_341 = arith.constant dense<0.000000e+00> : vector<4x5xf32>
    %460 = tpu.matmul %444, %402, %cst_341 {dimension_numbers = #tpu.dot_dimension_numbers<[1], [0], [0], [1], [0, 0, 1, 1], [], []>} : vector<4x5xf32>, vector<5x5xf32>, vector<4x5xf32> -> vector<4x5xf32>
    %461 = vector.broadcast %414 : vector<1x5xf32> to vector<4x5xf32>
    %462 = arith.addf %460, %461 : vector<4x5xf32>
    %463 = arith.addf %447, %456 : vector<4x5xf32>
    %464 = arith.negf %463 : vector<4x5xf32>
    %465 = math.exp %464 : vector<4x5xf32>
    %cst_342 = arith.constant 1.000000e+00 : f32
    %466 = vector.broadcast %cst_342 : f32 to vector<4x5xf32>
    %467 = arith.addf %466, %465 : vector<4x5xf32>
    %468 = arith.divf %466, %467 : vector<4x5xf32>
    %469 = arith.addf %450, %459 : vector<4x5xf32>
    %470 = arith.negf %469 : vector<4x5xf32>
    %471 = math.exp %470 : vector<4x5xf32>
    %cst_343 = arith.constant 1.000000e+00 : f32
    %472 = vector.broadcast %cst_343 : f32 to vector<4x5xf32>
    %473 = arith.addf %472, %471 : vector<4x5xf32>
    %474 = arith.divf %472, %473 : vector<4x5xf32>
    %475 = arith.mulf %468, %462 : vector<4x5xf32>
    %476 = arith.addf %453, %475 : vector<4x5xf32>
    %477 = math.tanh %476 : vector<4x5xf32>
    %cst_344 = arith.constant 1.000000e+00 : f32
    %478 = vector.broadcast %cst_344 : f32 to vector<4x5xf32>
    %479 = arith.subf %478, %474 : vector<4x5xf32>
    %480 = arith.mulf %479, %477 : vector<4x5xf32>
    %481 = arith.mulf %474, %444 : vector<4x5xf32>
    %482 = arith.addf %480, %481 : vector<4x5xf32>
    %cst_345 = arith.constant 0.00999999977 : f32
    %483 = vector.broadcast %cst_345 : f32 to vector<4x5xf32>
    %484 = arith.mulf %483, %390 : vector<4x5xf32>
    %485 = arith.maximumf %390, %484 : vector<4x5xf32>
    %cst_346 = arith.constant 0.00999999977 : f32
    %486 = vector.broadcast %cst_346 : f32 to vector<4x5xf32>
    %487 = arith.mulf %486, %482 : vector<4x5xf32>
    %488 = arith.maximumf %482, %487 : vector<4x5xf32>
    %c0_347 = arith.constant 0 : index
    %c0_348 = arith.constant 0 : index
    %489 = vector.load %arg2[%c0_347, %c0_348] : memref<4x6xf32, #tpu.memory_space<vmem>>, vector<4x6xf32>
    %c0_349 = arith.constant 0 : index
    %c0_350 = arith.constant 0 : index
    %490 = vector.load %arg18[%c0_349, %c0_350] : memref<1x64xf32, #tpu.memory_space<vmem>>, vector<1x64xf32>
    %491 = vector.extract_strided_slice %485 {offsets = [0, 0], sizes = [1, 5], strides = [1, 1]} : vector<4x5xf32> to vector<1x5xf32>
    %c0_351 = arith.constant 0 : index
    %c0_352 = arith.constant 0 : index
    %c0_353 = arith.constant 0 : index
    %492 = vector.load %arg15[%c0_351, %c0_352, %c0_353] : memref<4x5x64xf32, #tpu.memory_space<vmem>>, vector<1x5x64xf32>
    %493 = vector.shape_cast %492 : vector<1x5x64xf32> to vector<5x64xf32>
    %cst_354 = arith.constant dense<0.000000e+00> : vector<1x64xf32>
    %494 = tpu.matmul %491, %493, %cst_354 {dimension_numbers = #tpu.dot_dimension_numbers<[1], [0], [0], [1], [0, 0, 1, 1], [], []>} : vector<1x5xf32>, vector<5x64xf32>, vector<1x64xf32> -> vector<1x64xf32>
    %495 = arith.addf %490, %494 : vector<1x64xf32>
    %496 = vector.extract_strided_slice %488 {offsets = [0, 0], sizes = [1, 5], strides = [1, 1]} : vector<4x5xf32> to vector<1x5xf32>
    %c0_355 = arith.constant 0 : index
    %c0_356 = arith.constant 0 : index
    %c0_357 = arith.constant 0 : index
    %497 = vector.load %arg16[%c0_355, %c0_356, %c0_357] : memref<4x5x64xf32, #tpu.memory_space<vmem>>, vector<1x5x64xf32>
    %498 = vector.shape_cast %497 : vector<1x5x64xf32> to vector<5x64xf32>
    %cst_358 = arith.constant dense<0.000000e+00> : vector<1x64xf32>
    %499 = tpu.matmul %496, %498, %cst_358 {dimension_numbers = #tpu.dot_dimension_numbers<[1], [0], [0], [1], [0, 0, 1, 1], [], []>} : vector<1x5xf32>, vector<5x64xf32>, vector<1x64xf32> -> vector<1x64xf32>
    %500 = arith.addf %495, %499 : vector<1x64xf32>
    %501 = vector.extract_strided_slice %489 {offsets = [0, 0], sizes = [1, 6], strides = [1, 1]} : vector<4x6xf32> to vector<1x6xf32>
    %c0_359 = arith.constant 0 : index
    %c0_360 = arith.constant 0 : index
    %c0_361 = arith.constant 0 : index
    %502 = vector.load %arg17[%c0_359, %c0_360, %c0_361] : memref<4x6x64xf32, #tpu.memory_space<vmem>>, vector<1x6x64xf32>
    %503 = vector.shape_cast %502 : vector<1x6x64xf32> to vector<6x64xf32>
    %cst_362 = arith.constant dense<0.000000e+00> : vector<1x64xf32>
    %504 = tpu.matmul %501, %503, %cst_362 {dimension_numbers = #tpu.dot_dimension_numbers<[1], [0], [0], [1], [0, 0, 1, 1], [], []>} : vector<1x6xf32>, vector<6x64xf32>, vector<1x64xf32> -> vector<1x64xf32>
    %505 = arith.addf %500, %504 : vector<1x64xf32>
    %506 = vector.extract_strided_slice %485 {offsets = [1, 0], sizes = [1, 5], strides = [1, 1]} : vector<4x5xf32> to vector<1x5xf32>
    %c1_363 = arith.constant 1 : index
    %c0_364 = arith.constant 0 : index
    %c0_365 = arith.constant 0 : index
    %507 = vector.load %arg15[%c1_363, %c0_364, %c0_365] : memref<4x5x64xf32, #tpu.memory_space<vmem>>, vector<1x5x64xf32>
    %508 = vector.shape_cast %507 : vector<1x5x64xf32> to vector<5x64xf32>
    %cst_366 = arith.constant dense<0.000000e+00> : vector<1x64xf32>
    %509 = tpu.matmul %506, %508, %cst_366 {dimension_numbers = #tpu.dot_dimension_numbers<[1], [0], [0], [1], [0, 0, 1, 1], [], []>} : vector<1x5xf32>, vector<5x64xf32>, vector<1x64xf32> -> vector<1x64xf32>
    %510 = arith.addf %505, %509 : vector<1x64xf32>
    %511 = vector.extract_strided_slice %488 {offsets = [1, 0], sizes = [1, 5], strides = [1, 1]} : vector<4x5xf32> to vector<1x5xf32>
    %c1_367 = arith.constant 1 : index
    %c0_368 = arith.constant 0 : index
    %c0_369 = arith.constant 0 : index
    %512 = vector.load %arg16[%c1_367, %c0_368, %c0_369] : memref<4x5x64xf32, #tpu.memory_space<vmem>>, vector<1x5x64xf32>
    %513 = vector.shape_cast %512 : vector<1x5x64xf32> to vector<5x64xf32>
    %cst_370 = arith.constant dense<0.000000e+00> : vector<1x64xf32>
    %514 = tpu.matmul %511, %513, %cst_370 {dimension_numbers = #tpu.dot_dimension_numbers<[1], [0], [0], [1], [0, 0, 1, 1], [], []>} : vector<1x5xf32>, vector<5x64xf32>, vector<1x64xf32> -> vector<1x64xf32>
    %515 = arith.addf %510, %514 : vector<1x64xf32>
    %516 = vector.extract_strided_slice %489 {offsets = [1, 0], sizes = [1, 6], strides = [1, 1]} : vector<4x6xf32> to vector<1x6xf32>
    %c1_371 = arith.constant 1 : index
    %c0_372 = arith.constant 0 : index
    %c0_373 = arith.constant 0 : index
    %517 = vector.load %arg17[%c1_371, %c0_372, %c0_373] : memref<4x6x64xf32, #tpu.memory_space<vmem>>, vector<1x6x64xf32>
    %518 = vector.shape_cast %517 : vector<1x6x64xf32> to vector<6x64xf32>
    %cst_374 = arith.constant dense<0.000000e+00> : vector<1x64xf32>
    %519 = tpu.matmul %516, %518, %cst_374 {dimension_numbers = #tpu.dot_dimension_numbers<[1], [0], [0], [1], [0, 0, 1, 1], [], []>} : vector<1x6xf32>, vector<6x64xf32>, vector<1x64xf32> -> vector<1x64xf32>
    %520 = arith.addf %515, %519 : vector<1x64xf32>
    %521 = vector.extract_strided_slice %485 {offsets = [2, 0], sizes = [1, 5], strides = [1, 1]} : vector<4x5xf32> to vector<1x5xf32>
    %c2_375 = arith.constant 2 : index
    %c0_376 = arith.constant 0 : index
    %c0_377 = arith.constant 0 : index
    %522 = vector.load %arg15[%c2_375, %c0_376, %c0_377] : memref<4x5x64xf32, #tpu.memory_space<vmem>>, vector<1x5x64xf32>
    %523 = vector.shape_cast %522 : vector<1x5x64xf32> to vector<5x64xf32>
    %cst_378 = arith.constant dense<0.000000e+00> : vector<1x64xf32>
    %524 = tpu.matmul %521, %523, %cst_378 {dimension_numbers = #tpu.dot_dimension_numbers<[1], [0], [0], [1], [0, 0, 1, 1], [], []>} : vector<1x5xf32>, vector<5x64xf32>, vector<1x64xf32> -> vector<1x64xf32>
    %525 = arith.addf %520, %524 : vector<1x64xf32>
    %526 = vector.extract_strided_slice %488 {offsets = [2, 0], sizes = [1, 5], strides = [1, 1]} : vector<4x5xf32> to vector<1x5xf32>
    %c2_379 = arith.constant 2 : index
    %c0_380 = arith.constant 0 : index
    %c0_381 = arith.constant 0 : index
    %527 = vector.load %arg16[%c2_379, %c0_380, %c0_381] : memref<4x5x64xf32, #tpu.memory_space<vmem>>, vector<1x5x64xf32>
    %528 = vector.shape_cast %527 : vector<1x5x64xf32> to vector<5x64xf32>
    %cst_382 = arith.constant dense<0.000000e+00> : vector<1x64xf32>
    %529 = tpu.matmul %526, %528, %cst_382 {dimension_numbers = #tpu.dot_dimension_numbers<[1], [0], [0], [1], [0, 0, 1, 1], [], []>} : vector<1x5xf32>, vector<5x64xf32>, vector<1x64xf32> -> vector<1x64xf32>
    %530 = arith.addf %525, %529 : vector<1x64xf32>
    %531 = vector.extract_strided_slice %489 {offsets = [2, 0], sizes = [1, 6], strides = [1, 1]} : vector<4x6xf32> to vector<1x6xf32>
    %c2_383 = arith.constant 2 : index
    %c0_384 = arith.constant 0 : index
    %c0_385 = arith.constant 0 : index
    %532 = vector.load %arg17[%c2_383, %c0_384, %c0_385] : memref<4x6x64xf32, #tpu.memory_space<vmem>>, vector<1x6x64xf32>
    %533 = vector.shape_cast %532 : vector<1x6x64xf32> to vector<6x64xf32>
    %cst_386 = arith.constant dense<0.000000e+00> : vector<1x64xf32>
    %534 = tpu.matmul %531, %533, %cst_386 {dimension_numbers = #tpu.dot_dimension_numbers<[1], [0], [0], [1], [0, 0, 1, 1], [], []>} : vector<1x6xf32>, vector<6x64xf32>, vector<1x64xf32> -> vector<1x64xf32>
    %535 = arith.addf %530, %534 : vector<1x64xf32>
    %536 = vector.extract_strided_slice %485 {offsets = [3, 0], sizes = [1, 5], strides = [1, 1]} : vector<4x5xf32> to vector<1x5xf32>
    %c3 = arith.constant 3 : index
    %c0_387 = arith.constant 0 : index
    %c0_388 = arith.constant 0 : index
    %537 = vector.load %arg15[%c3, %c0_387, %c0_388] : memref<4x5x64xf32, #tpu.memory_space<vmem>>, vector<1x5x64xf32>
    %538 = vector.shape_cast %537 : vector<1x5x64xf32> to vector<5x64xf32>
    %cst_389 = arith.constant dense<0.000000e+00> : vector<1x64xf32>
    %539 = tpu.matmul %536, %538, %cst_389 {dimension_numbers = #tpu.dot_dimension_numbers<[1], [0], [0], [1], [0, 0, 1, 1], [], []>} : vector<1x5xf32>, vector<5x64xf32>, vector<1x64xf32> -> vector<1x64xf32>
    %540 = arith.addf %535, %539 : vector<1x64xf32>
    %541 = vector.extract_strided_slice %488 {offsets = [3, 0], sizes = [1, 5], strides = [1, 1]} : vector<4x5xf32> to vector<1x5xf32>
    %c3_390 = arith.constant 3 : index
    %c0_391 = arith.constant 0 : index
    %c0_392 = arith.constant 0 : index
    %542 = vector.load %arg16[%c3_390, %c0_391, %c0_392] : memref<4x5x64xf32, #tpu.memory_space<vmem>>, vector<1x5x64xf32>
    %543 = vector.shape_cast %542 : vector<1x5x64xf32> to vector<5x64xf32>
    %cst_393 = arith.constant dense<0.000000e+00> : vector<1x64xf32>
    %544 = tpu.matmul %541, %543, %cst_393 {dimension_numbers = #tpu.dot_dimension_numbers<[1], [0], [0], [1], [0, 0, 1, 1], [], []>} : vector<1x5xf32>, vector<5x64xf32>, vector<1x64xf32> -> vector<1x64xf32>
    %545 = arith.addf %540, %544 : vector<1x64xf32>
    %546 = vector.extract_strided_slice %489 {offsets = [3, 0], sizes = [1, 6], strides = [1, 1]} : vector<4x6xf32> to vector<1x6xf32>
    %c3_394 = arith.constant 3 : index
    %c0_395 = arith.constant 0 : index
    %c0_396 = arith.constant 0 : index
    %547 = vector.load %arg17[%c3_394, %c0_395, %c0_396] : memref<4x6x64xf32, #tpu.memory_space<vmem>>, vector<1x6x64xf32>
    %548 = vector.shape_cast %547 : vector<1x6x64xf32> to vector<6x64xf32>
    %cst_397 = arith.constant dense<0.000000e+00> : vector<1x64xf32>
    %549 = tpu.matmul %546, %548, %cst_397 {dimension_numbers = #tpu.dot_dimension_numbers<[1], [0], [0], [1], [0, 0, 1, 1], [], []>} : vector<1x6xf32>, vector<6x64xf32>, vector<1x64xf32> -> vector<1x64xf32>
    %550 = arith.addf %545, %549 : vector<1x64xf32>
    %cst_398 = arith.constant 0.00999999977 : f32
    %551 = vector.broadcast %cst_398 : f32 to vector<1x64xf32>
    %552 = arith.mulf %551, %550 : vector<1x64xf32>
    %553 = arith.maximumf %550, %552 : vector<1x64xf32>
    %c0_399 = arith.constant 0 : index
    %c0_400 = arith.constant 0 : index
    %554 = vector.load %arg19[%c0_399, %c0_400] : memref<64x64xf32, #tpu.memory_space<vmem>>, vector<64x64xf32>
    %cst_401 = arith.constant dense<0.000000e+00> : vector<1x64xf32>
    %555 = tpu.matmul %553, %554, %cst_401 {dimension_numbers = #tpu.dot_dimension_numbers<[1], [0], [0], [1], [0, 0, 1, 1], [], []>} : vector<1x64xf32>, vector<64x64xf32>, vector<1x64xf32> -> vector<1x64xf32>
    %c0_402 = arith.constant 0 : index
    %c0_403 = arith.constant 0 : index
    %556 = vector.load %arg20[%c0_402, %c0_403] : memref<1x64xf32, #tpu.memory_space<vmem>>, vector<1x64xf32>
    %557 = arith.addf %555, %556 : vector<1x64xf32>
    %cst_404 = arith.constant 0.00999999977 : f32
    %558 = vector.broadcast %cst_404 : f32 to vector<1x64xf32>
    %559 = arith.mulf %558, %557 : vector<1x64xf32>
    %560 = arith.maximumf %557, %559 : vector<1x64xf32>
    %c0_405 = arith.constant 0 : index
    %c0_406 = arith.constant 0 : index
    %561 = vector.load %arg21[%c0_405, %c0_406] : memref<64x32xf32, #tpu.memory_space<vmem>>, vector<64x32xf32>
    %cst_407 = arith.constant dense<0.000000e+00> : vector<1x32xf32>
    %562 = tpu.matmul %560, %561, %cst_407 {dimension_numbers = #tpu.dot_dimension_numbers<[1], [0], [0], [1], [0, 0, 1, 1], [], []>} : vector<1x64xf32>, vector<64x32xf32>, vector<1x32xf32> -> vector<1x32xf32>
    %c0_408 = arith.constant 0 : index
    %c0_409 = arith.constant 0 : index
    %563 = vector.load %arg22[%c0_408, %c0_409] : memref<1x32xf32, #tpu.memory_space<vmem>>, vector<1x32xf32>
    %564 = arith.addf %562, %563 : vector<1x32xf32>
    %cst_410 = arith.constant 0.00999999977 : f32
    %565 = vector.broadcast %cst_410 : f32 to vector<1x32xf32>
    %566 = arith.mulf %565, %564 : vector<1x32xf32>
    %567 = arith.maximumf %564, %566 : vector<1x32xf32>
    %c0_411 = arith.constant 0 : index
    %c0_412 = arith.constant 0 : index
    %568 = vector.load %arg23[%c0_411, %c0_412] : memref<32x2xf32, #tpu.memory_space<vmem>>, vector<32x2xf32>
    %cst_413 = arith.constant dense<0.000000e+00> : vector<1x2xf32>
    %569 = tpu.matmul %567, %568, %cst_413 {dimension_numbers = #tpu.dot_dimension_numbers<[1], [0], [0], [1], [0, 0, 1, 1], [], []>} : vector<1x32xf32>, vector<32x2xf32>, vector<1x2xf32> -> vector<1x2xf32>
    %c0_414 = arith.constant 0 : index
    %c0_415 = arith.constant 0 : index
    %570 = vector.load %arg24[%c0_414, %c0_415] : memref<1x2xf32, #tpu.memory_space<vmem>>, vector<1x2xf32>
    %571 = arith.addf %569, %570 : vector<1x2xf32>
    %572 = arith.negf %571 : vector<1x2xf32>
    %573 = math.exp %572 : vector<1x2xf32>
    %cst_416 = arith.constant 1.000000e+00 : f32
    %574 = vector.broadcast %cst_416 : f32 to vector<1x2xf32>
    %575 = arith.addf %574, %573 : vector<1x2xf32>
    %576 = arith.divf %574, %575 : vector<1x2xf32>
    %c0_417 = arith.constant 0 : index
    %c0_418 = arith.constant 0 : index
    %577 = vector.load %arg27[%c0_417, %c0_418] : memref<1x2xf32, #tpu.memory_space<vmem>>, vector<1x2xf32>
    tpu.vector_store %arg27[%c0_417, %c0_418], %576 {strides = array<i32>} : memref<1x2xf32, #tpu.memory_space<vmem>>, vector<1x2xf32>,
    %c0_419 = arith.constant 0 : index
    %c0_420 = arith.constant 0 : index
    %578 = vector.load %arg25[%c0_419, %c0_420] : memref<1x2xf32, #tpu.memory_space<vmem>>, vector<1x2xf32>
    %579 = arith.mulf %576, %578 : vector<1x2xf32>
    %cst_421 = arith.constant dense<0.000000e+00> : vector<1xf32>
    %580 = vector.multi_reduction <add>, %579, %cst_421 [1] : vector<1x2xf32> to vector<1xf32>
    %581 = vector.shape_cast %580 : vector<1xf32> to vector<1x1xf32>
    %c0_422 = arith.constant 0 : index
    %c0_423 = arith.constant 0 : index
    %582 = vector.load %arg26[%c0_422, %c0_423] : memref<1x1xf32, #tpu.memory_space<vmem>>, vector<1x1xf32>
    tpu.vector_store %arg26[%c0_422, %c0_423], %581 {strides = array<i32>} : memref<1x1xf32, #tpu.memory_space<vmem>>, vector<1x1xf32>,
    return
  }
}

</mosaic_0001>

<bundles_post_ra>
// kernel: energy_latency_gnn_1_4_forward.1
= control target key start
LH: loop header
LB: loop body
LE: loop exit
PB: predicated region body
PF: predicated region fallthrough
CT: control target
= control target key end

     0   :  { %s7224_s0 = inlined_call_operand.vmem [shape: f32[4,4], index: 0, kind: input, shape index: {}]   ;;  %s7225_s1 = inlined_call_operand.vmem [shape: f32[4,1], index: 1, kind: input, shape index: {}]   ;;  %s7226_s2 = inlined_call_operand.vmem [shape: f32[4,6], index: 2, kind: input, shape index: {}]   ;;  %s7227_s3 = inlined_call_operand.vmem [shape: f32[2,3,1,5], index: 3, kind: input, shape index: {}]   ;;  %s7228_s4 = inlined_call_operand.vmem [shape: f32[2,3,5,5], index: 4, kind: input, shape index: {}]   ;;  %s7229_s5 = inlined_call_operand.vmem [shape: f32[2,3,1,5], index: 5, kind: input, shape index: {}]   ;;  %s7230_s6 = inlined_call_operand.vmem [shape: f32[2,3,1,5], index: 6, kind: input, shape index: {}]   ;;  %s7231_s7 = inlined_call_operand.vmem [shape: f32[2,3,5,5], index: 7, kind: input, shape index: {}]   ;;  %s7232_s8 = inlined_call_operand.vmem [shape: f32[2,3,5,5], index: 8, kind: input, shape index: {}]   ;;  %s7233_s9 = inlined_call_operand.vmem [shape: f32[2,3,1,5], index: 9, kind: input, shape index: {}]   ;;  %s7234_s10 = inlined_call_operand.vmem [shape: f32[2,3,1,5], index: 10, kind: input, shape index: {}]   ;;  %s7235_s11 = inlined_call_operand.vmem [shape: f32[2,3,5,5], index: 11, kind: input, shape index: {}]   ;;  %s7236_s12 = inlined_call_operand.vmem [shape: f32[2,3,5,5], index: 12, kind: input, shape index: {}]   ;;  %s7237_s13 = inlined_call_operand.vmem [shape: f32[2,3,1,5], index: 13, kind: input, shape index: {}]   ;;  %s7238_s14 = inlined_call_operand.vmem [shape: f32[2,3,1,5], index: 14, kind: input, shape index: {}]   ;;  %s7239_s15 = inlined_call_operand.vmem [shape: f32[4,5,64], index: 15, kind: input, shape index: {}]   ;;  %s7240_s16 = inlined_call_operand.vmem [shape: f32[4,5,64], index: 16, kind: input, shape index: {}]   ;;  %s7241_s17 = inlined_call_operand.vmem [shape: f32[4,6,64], index: 17, kind: input, shape index: {}]   ;;  %s7242_s18 = inlined_call_operand.vmem [shape: f32[1,64], index: 18, kind: input, shape index: {}]   ;;  %s7243_s19 = inlined_call_operand.vmem [shape: f32[64,64], index: 19, kind: input, shape index: {}]   ;;  %s7244_s20 = inlined_call_operand.vmem [shape: f32[1,64], index: 20, kind: input, shape index: {}]   ;;  %s7245_s21 = inlined_call_operand.vmem [shape: f32[64,32], index: 21, kind: input, shape index: {}]   ;;  %s7246_s22 = inlined_call_operand.vmem [shape: f32[1,32], index: 22, kind: input, shape index: {}]   ;;  %s7247_s23 = inlined_call_operand.vmem [shape: f32[32,2], index: 23, kind: input, shape index: {}]   ;;  %s7248_s24 = inlined_call_operand.vmem [shape: f32[1,2], index: 24, kind: input, shape index: {}]   ;;  %s7249_s25 = inlined_call_operand.vmem [shape: f32[1,2], index: 25, kind: input, shape index: {}]   ;;  %s7250_s26 = inlined_call_operand.hbm [shape: f32[1,1], index: 26, kind: output, shape index: {0}]   ;;  %s7251_s27 = inlined_call_operand.hbm [shape: f32[1,2], index: 27, kind: output, shape index: {1}]  }
   0x1   :  { %7260 = sst [smem:[#allocation8_spill]] %s7224_s0 }
   0x2   :  { %7261 = sst [smem:[#allocation9_spill]] %s7225_s1 }
   0x3   :  { %7262 = sst [smem:[#allocation10_spill]] %s7226_s2 }
   0x4   :  { %7263 = sst [smem:[#allocation11_spill]] %s7227_s3 }
   0x5   :  { %7264 = sst [smem:[#allocation12_spill]] %s7229_s5 }
   0x6   :  { %7265 = sst [smem:[#allocation13_spill]] %s7230_s6 }
   0x7   :  { %7266 = sst [smem:[#allocation14_spill]] %s7231_s7 }
   0x8   :  { %7267 = sst [smem:[#allocation15_spill]] %s7232_s8 }
   0x9   :  { %7268 = sst [smem:[#allocation16_spill]] %s7233_s9 }
   0xa   :  { %7269 = sst [smem:[#allocation17_spill]] %s7234_s10 }
   0xb   :  { %7270 = sst [smem:[#allocation18_spill]] %s7235_s11 }
   0xc   :  { %33 = vsyncpa [#allocation3], 0  ;;  %s7271_s8 = sld [smem:[#allocation9_spill]]  ;;  %vm93_vm0 = vcmask 1043456   ;;  %vm89_vm1 = vcmask 31744   ;;  %v6278_v1 = vmov 0.0  }
   0xd   :  { %5692 = vmatprep.subr.mxu0 %v6278_v1  ;;  %vm6279_vm2 = vmmov 0   ;;  %s7272_s5 = sld [smem:[#allocation8_spill]] }
   0xe   :  { %5694 = vmatprep.mubr.msk.f32.mxu0 %vm6279_vm2, %v6278_v1 }
  0x12   :  { %v88_v0 = vld [vmem:[%s7271_s8] sm:$0xf] }
  0x13   :  { %v6432_v2 = vld [vmem:[%s7272_s5] sm:$0xf] }
  0x14   :  { %34 = vsyncpa [#allocation5], 0  ;;  %5693 = vmatpush3.msk.msra.mxu0 %vm93_vm0, %v88_v0  ;;  %5697 = vmatprep.subr.mxu1 %v6278_v1  ;;  %s7273_s10 = sld [smem:[#allocation11_spill]]  ;;  %vm192_vm3 = vcmask 1040384   ;;  %vm188_vm4 = vcmask 7168   ;;  %s7274_s28 = sld [smem:[#allocation12_spill]] }
  0x15   :  { %5695 = vmatmul.mubr.msk.f32.vlgmr.msra.gmra.mrb[0].mxu0 %vm89_vm1, %v6432_v2  ;;  %5702 = vmatprep.subr.mxu0 %v6278_v1  ;;  %s7275_s6 = sld [smem:[#allocation13_spill]]  ;;  %s7276_s8 = sld [smem:[#allocation14_spill]]  ;;  %vm933_vm5 = vcmask 1044480   ;;  %vm929_vm6 = vcmask 39936   ;;  %vm4230_vm7 = vcmask 1045504   ;;  %vm4226_vm8 = vcmask 48128  }
  0x16   :  { %5699 = vmatprep.mubr.msk.f32.mxu1 %vm6279_vm2, %v6278_v1  ;;  %5704 = vmatprep.mubr.msk.f32.mxu0 %vm6279_vm2, %v6278_v1  ;;  %s7277_s1 = sld [smem:[#allocation15_spill]]  ;;  %s7278_s4 = sld [smem:[#allocation16_spill]]  ;;  %vm5027_vm9 = vcmask 523264   ;;  %vm5192_vm10 = vcmask 261120   ;;  %vm5272_vm11 = vcmask 8192  }
  0x17   :  { %s7279_s5 = sld [smem:[#allocation17_spill]]  ;;  %s6281_s2 = smov [#allocation4]  }
  0x1a   :  { %v167_v3 = vld [vmem:[%s7273_s10] sm:$0x1]  ;;  %v5311_v4 = vld [vmem:[%s7273_s10 + $0x1] sm:$0x1]  ;;  %v5312_v5 = vld [vmem:[%s7273_s10 + $0x2] sm:$0x1] }
  0x1b   :  { %5698 = vmatpush3.msk.msra.mxu1 %vm192_vm3, %v167_v3  ;;  %5703 = vmatpush3.msk.msra.mxu0 %vm192_vm3, %v5311_v4  ;;  %v5331_v7 = vld [vmem:[%s7273_s10 + $0x3] sm:$0x1]  ;;  %v5332_v9 = vld [vmem:[%s7273_s10 + $0x4] sm:$0x1]  ;;  %v5333_v10 = vld [vmem:[%s7273_s10 + $0x5] sm:$0x1] }
  0x1c   :  { %5707 = vmatprep.subr.mxu1 %v6278_v1  ;;  %5712 = vmatprep.subr.mxu0 %v6278_v1  ;;  %v5317_v11 = vld [vmem:[%s7274_s28] ss:$0 sm:$0xff]  ;;  %v5320_v12 = vld [vmem:[%s7274_s28 + $0x1] ss:$0 sm:$0xff]  ;;  %v5340_v20 = vld [vmem:[%s7274_s28 + $0x3] ss:$0 sm:$0xff] }
  0x1d   :  { %v5326_v13 = vld [vmem:[%s7275_s6] ss:$0 sm:$0xff]  ;;  %v5328_v22 = vld [vmem:[%s7275_s6 + $0x1] ss:$0 sm:$0xff]  ;;  %v5349_v24 = vld [vmem:[%s7275_s6 + $0x3] ss:$0 sm:$0xff] }
  0x1e   :  { %v5343_v31 = vld [vmem:[%s7274_s28 + $0x4] ss:$0 sm:$0xff]  ;;  %v5323_v50 = vld [vmem:[%s7274_s28 + $0x2] ss:$0 sm:$0xff]  ;;  %v5346_v56 = vld [vmem:[%s7274_s28 + $0x5] ss:$0 sm:$0xff] }
  0x1f   :  { %v5351_v33 = vld [vmem:[%s7275_s6 + $0x4] ss:$0 sm:$0xff]  ;;  %v5330_v51 = vld [vmem:[%s7275_s6 + $0x2] ss:$0 sm:$0xff]  ;;  %v5353_v57 = vld [vmem:[%s7275_s6 + $0x5] ss:$0 sm:$0xff] }
  0x20   :  { %s7280_s28 = sld [smem:[#allocation18_spill]] }
  0xe8   :  { %v163_v6 = vpop.f32.mrb[0].mxu0 }
  0xe9   :  { %v5696_v8 = vpop.f32.mrb[1].mxu0  ;;  %5700 = vmatmul.mubr.msk.f32.vlgmr.msra.gmra.mrb[0].mxu1 %vm188_vm4, %v163_v6  ;;  %5705 = vmatmul.mubr.msk.f32.vlgmr.msra.gmra.mrb[2].mxu0 %vm188_vm4, %v163_v6 }
  0xea   :  { %5708 = vmatpush3.msk.msra.mxu1 %vm192_vm3, %v5312_v5  ;;  %5709 = vmatprep.mubr.msk.f32.mxu1 %vm6279_vm2, %v6278_v1 }
  0xeb   :  { %5713 = vmatpush3.msk.msra.mxu0 %vm192_vm3, %v5331_v7  ;;  %5714 = vmatprep.mubr.msk.f32.mxu0 %vm6279_vm2, %v6278_v1 }
  0xec   :  { %5717 = vmatprep.subr.mxu1 %v6278_v1  ;;  %5722 = vmatprep.subr.mxu0 %v6278_v1 }
  0xed   :  { %5710 = vmatmul.mubr.msk.f32.vlgmr.msra.gmra.mrb[2].mxu1 %vm188_vm4, %v163_v6  ;;  %5715 = vmatmul.mubr.msk.f32.vlgmr.msra.gmra.mrb[4].mxu0 %vm188_vm4, %v163_v6 }
  0xee   :  { %5718 = vmatpush3.msk.msra.mxu1 %vm192_vm3, %v5332_v9  ;;  %5719 = vmatprep.mubr.msk.f32.mxu1 %vm6279_vm2, %v6278_v1 }
  0xef   :  { %5723 = vmatpush3.msk.msra.mxu0 %vm192_vm3, %v5333_v10  ;;  %5724 = vmatprep.mubr.msk.f32.mxu0 %vm6279_vm2, %v6278_v1 }
  0xf0   :  { %5727 = vmatprep.subr.mxu1 %v6278_v1  ;;  %5732 = vmatprep.subr.mxu0 %v6278_v1 }
  0xf1   :  { %5720 = vmatmul.mubr.msk.f32.vlgmr.msra.gmra.mrb[4].mxu1 %vm188_vm4, %v163_v6  ;;  %5725 = vmatmul.mubr.msk.f32.vlgmr.msra.gmra.mrb[6].mxu0 %vm188_vm4, %v163_v6 }
  0xf2   :  { %5729 = vmatprep.mubr.msk.f32.mxu1 %vm6279_vm2, %v6278_v1  ;;  %5734 = vmatprep.mubr.msk.f32.mxu0 %vm6279_vm2, %v6278_v1 }
 0x1bc   :  { %v262_v14 = vpop.f32.mrb[0].mxu1  ;;  %v341_v15 = vpop.f32.mrb[2].mxu0 }
 0x1bd   :  { %v263_v16 = vadd.f32 %v5317_v11, %v262_v14  ;;  %v5701_v17 = vpop.f32.mrb[1].mxu1  ;;  %v5706_v18 = vpop.f32.mrb[3].mxu0  ;;  %v342_v19 = vadd.f32 %v5320_v12, %v341_v15  ;;  %v5358_v14 = vld [vmem:[%s7276_s8 + $0x8] sm:$0x1f]  ;;  %v5359_v15 = vld [vmem:[%s7276_s8 + $0x10] sm:$0x1f] }
 0x1bf   :  { %v430_v21 = vadd.f32 %v5326_v13, %v263_v16  ;;  %v443_v30 = vadd.f32 %v5328_v22, %v342_v19  ;;  %v903_v13 = vld [vmem:[%s7276_s8] sm:$0x1f] }
 0x1c0   :  { %v420_v23 = vpop.f32.mrb[2].mxu1  ;;  %v554_v25 = vpop.f32.mrb[4].mxu0  ;;  %v6601_v22 = vld [vmem:[%s7278_s4] ss:$0 sm:$0xff] }
 0x1c1   :  { %v5327_v26 = vmul.f32 -1.442695, %v430_v21  ;;  %v555_v27 = vadd.f32 %v5340_v20, %v554_v25  ;;  %v5711_v28 = vpop.f32.mrb[3].mxu1  ;;  %v5716_v29 = vpop.f32.mrb[5].mxu0  ;;  %v5329_v40 = vmul.f32 -1.442695, %v443_v30  ;;  %v421_v54 = vadd.f32 %v5323_v50, %v420_v23 }
 0x1c2   :  { %v908_v20 = vld [vmem:[%s7277_s1] sm:$0x1f]  ;;  %v5360_v21 = vld [vmem:[%s7277_s1 + $0x8] sm:$0x1f] }
 0x1c3   :  { %6126 = vpow2.f32 %v5327_v26  ;;  %v722_v32 = vadd.f32 %v5349_v24, %v555_v27  ;;  %v6606_v23 = vld [vmem:[%s7278_s4 + $0x1] ss:$0 sm:$0xff]  ;;  %v6611_v24 = vld [vmem:[%s7279_s5] ss:$0 sm:$0xff] }
 0x1c4   :  { %v633_v34 = vpop.f32.mrb[4].mxu1  ;;  %v712_v35 = vpop.f32.mrb[6].mxu0 }
 0x1c5   :  { %v5350_v36 = vmul.f32 -1.442695, %v722_v32  ;;  %v634_v37 = vadd.f32 %v5343_v31, %v633_v34  ;;  %v5721_v38 = vpop.f32.mrb[5].mxu1  ;;  %v5726_v39 = vpop.f32.mrb[7].mxu0  ;;  %v713_v60 = vadd.f32 %v5346_v56, %v712_v35  ;;  %v6619_v32 = vld [vmem:[%s7279_s5 + $0x1] ss:$0 sm:$0xff] }
 0x1c6   :  { %v5394_v56 = vld [vmem:[%s7276_s8 + $0x18] sm:$0x1f] }
 0x1c7   :  { %6128 = vpow2.f32 %v5350_v36  ;;  %v735_v41 = vadd.f32 %v5351_v33, %v634_v37  ;;  %v5372_v37 = vld [vmem:[%s7278_s4 + $0x2] ss:$0 sm:$0xff] }
 0x1c8   :  { %6130 = vpow2.f32 %v5329_v40 }
 0x1c9   :  { %v5352_v42 = vmul.f32 -1.442695, %v735_v41 }
 0x1cb   :  { %6132 = vpow2.f32 %v5352_v42 }
 0x1cd   :  { %v6127_v43 = vpop.eup %6126 }
 0x1ce   :  { %v434_v44 = vadd.f32 1.0, %v6127_v43 }
 0x1d0   :  { %6134 = vrcp.f32 %v434_v44 }
 0x1d1   :  { %v6129_v45 = vpop.eup %6128 }
 0x1d2   :  { %v726_v46 = vadd.f32 1.0, %v6129_v45  ;;  %v6131_v47 = vpop.eup %6130 }
 0x1d3   :  { %v447_v49 = vadd.f32 1.0, %v6131_v47 }
 0x1d4   :  { %6136 = vrcp.f32 %v726_v46  ;;  %v6630_v46 = vld [vmem:[%s7279_s5 + $0x2] ss:$0 sm:$0xff] }
 0x1d5   :  { %v6133_v48 = vpop.eup %6132  ;;  %6138 = vrcp.f32 %v447_v49 }
 0x1d6   :  { %v739_v53 = vadd.f32 1.0, %v6133_v48 }
 0x1d8   :  { %6140 = vrcp.f32 %v739_v53 }
 0x1da   :  { %v6135_v52 = vpop.eup %6134 }
 0x1db   :  { %v456_v55 = vmul.f32 %v6135_v52, %v5330_v51 }
 0x1dd   :  { %v457_v58 = vadd.f32 %v456_v55, %v421_v54  ;;  %v5361_v55 = vld [vmem:[%s7277_s1 + $0x10] sm:$0x1f] }
 0x1de   :  { %v6137_v59 = vpop.eup %6136 }
 0x1df   :  { %6142 = vtanh.f32 %v457_v58  ;;  %v748_v61 = vmul.f32 %v6137_v59, %v5353_v57  ;;  %v6139_v63 = vpop.eup %6138  ;;  %v5395_v57 = vld [vmem:[%s7276_s8 + $0x20] sm:$0x1f]  ;;  %v5396_v58 = vld [vmem:[%s7276_s8 + $0x28] sm:$0x1f]  ;;  %v5397_v59 = vld [vmem:[%s7277_s1 + $0x18] sm:$0x1f] }
 0x1e0   :  { %v459_v3 = vsub.f32 1.0, %v6139_v63 }
 0x1e1   :  { %v749_v62 = vadd.f32 %v748_v61, %v713_v60  ;;  %v5398_v60 = vld [vmem:[%s7277_s1 + $0x20] sm:$0x1f]  ;;  %v6066_v61 = vadd.f32 %v6611_v24, %v6601_v22 }
 0x1e2   :  { %v6141_v0 = vpop.eup %6140 }
 0x1e3   :  { %6144 = vtanh.f32 %v749_v62  ;;  %v751_v6 = vsub.f32 1.0, %v6141_v0  ;;  %v6068_v0 = vadd.f32 %v6619_v32, %v6606_v23 }
 0x1e9   :  { %v6143_v4 = vpop.eup %6142 }
 0x1ea   :  { %v460_v5 = vmul.f32 %v6143_v4, %v459_v3 }
 0x1ec   :  { %v753_v7 = vmul.f32 0.01, %v460_v5 }
 0x1ed   :  { %v6145_v8 = vpop.eup %6144 }
 0x1ee   :  { %v754_v9 = vmax.f32 %v460_v5, %v753_v7  ;;  %v752_v10 = vmul.f32 %v6145_v8, %v751_v6  ;;  %v6714_v6 = vld [vmem:[%s7278_s4 + $0x3] ss:$0 sm:$0xff] }
 0x1f0   :  { %5728 = vmatpush3.msk.msra.mxu1 %vm93_vm0, %v754_v9  ;;  %v755_v11 = vmul.f32 0.01, %v752_v10 }
 0x1f1   :  { %5730 = vmatmul.mubr.msk.f32.vlgmr.msra.gmra.mrb[6].mxu1 %vm89_vm1, %v6432_v2  ;;  %5737 = vmatprep.subr.mxu1 %v6278_v1 }
 0x1f2   :  { %v756_v12 = vmax.f32 %v752_v10, %v755_v11  ;;  %5739 = vmatprep.mubr.msk.f32.mxu1 %vm6279_vm2, %v6278_v1  ;;  %5738 = vmatpush3.msk.msra.mxu1 %vm933_vm5, %v903_v13  ;;  %v6719_v10 = vld [vmem:[%s7279_s5 + $0x3] ss:$0 sm:$0xff] }
 0x1f3   :  { %5747 = vmatprep.subr.mxu1 %v6278_v1 }
 0x1f4   :  { %5733 = vmatpush3.msk.msra.mxu0 %vm93_vm0, %v756_v12 }
 0x1f5   :  { %5735 = vmatmul.mubr.msk.f32.vlgmr.msra.gmra.mrb[8].mxu0 %vm89_vm1, %v6432_v2  ;;  %5742 = vmatprep.subr.mxu0 %v6278_v1 }
 0x1f6   :  { %5744 = vmatprep.mubr.msk.f32.mxu0 %vm6279_vm2, %v6278_v1  ;;  %5743 = vmatpush3.msk.msra.mxu0 %vm933_vm5, %v5358_v14 }
 0x1f7   :  { %5752 = vmatprep.subr.mxu0 %v6278_v1 }
 0x2c4   :  { %v6552_v16 = vpop.f32.mrb[6].mxu1 }
 0x2c5   :  { %v5731_v17 = vpop.f32.mrb[7].mxu1  ;;  %5740 = vmatmul.mubr.msk.f32.vlgmr.msra.gmra.mrb[8].mxu1 %vm929_vm6, %v6552_v16  ;;  %5745 = vmatmul.mubr.msk.f32.vlgmr.msra.gmra.mrb[10].mxu0 %vm929_vm6, %v6552_v16 }
 0x2c6   :  { %5748 = vmatpush3.msk.msra.mxu1 %vm933_vm5, %v5359_v15  ;;  %5749 = vmatprep.mubr.msk.f32.mxu1 %vm6279_vm2, %v6278_v1 }
 0x2c7   :  { %5753 = vmatpush3.msk.msra.mxu0 %vm933_vm5, %v903_v13  ;;  %5754 = vmatprep.mubr.msk.f32.mxu0 %vm6279_vm2, %v6278_v1 }
 0x2c8   :  { %v6564_v18 = vpop.f32.mrb[8].mxu0  ;;  %5762 = vmatprep.subr.mxu0 %v6278_v1  ;;  %5757 = vmatprep.subr.mxu1 %v6278_v1 }
 0x2c9   :  { %5750 = vmatmul.mubr.msk.f32.vlgmr.msra.gmra.mrb[10].mxu1 %vm929_vm6, %v6552_v16  ;;  %v5736_v19 = vpop.f32.mrb[9].mxu0  ;;  %5755 = vmatmul.mubr.msk.f32.vlgmr.msra.gmra.mrb[12].mxu0 %vm929_vm6, %v6564_v18 }
 0x2ca   :  { %5763 = vmatpush3.msk.msra.mxu0 %vm933_vm5, %v5359_v15  ;;  %5764 = vmatprep.mubr.msk.f32.mxu0 %vm6279_vm2, %v6278_v1  ;;  %v6725_v15 = vld [vmem:[%s7278_s4 + $0x4] ss:$0 sm:$0xff] }
 0x2cb   :  { %5758 = vmatpush3.msk.msra.mxu1 %vm933_vm5, %v5358_v14  ;;  %5759 = vmatprep.mubr.msk.f32.mxu1 %vm6279_vm2, %v6278_v1 }
 0x2cc   :  { %5767 = vmatprep.subr.mxu0 %v6278_v1  ;;  %5772 = vmatprep.subr.mxu1 %v6278_v1 }
 0x2cd   :  { %5765 = vmatmul.mubr.msk.f32.vlgmr.msra.gmra.mrb[14].mxu0 %vm929_vm6, %v6564_v18  ;;  %5760 = vmatmul.mubr.msk.f32.vlgmr.msra.gmra.mrb[12].mxu1 %vm929_vm6, %v6564_v18 }
 0x2ce   :  { %5769 = vmatprep.mubr.msk.f32.mxu0 %vm6279_vm2, %v6278_v1  ;;  %5774 = vmatprep.mubr.msk.f32.mxu1 %vm6279_vm2, %v6278_v1 }
 0x2cf   :  { %5768 = vmatpush3.msk.msra.mxu0 %vm933_vm5, %v908_v20  ;;  %5773 = vmatpush3.msk.msra.mxu1 %vm933_vm5, %v5360_v21 }
 0x2d0   :  { %5777 = vmatprep.subr.mxu1 %v6278_v1  ;;  %5782 = vmatprep.subr.mxu0 %v6278_v1 }
 0x398   :  { %v1003_v25 = vpop.f32.mrb[8].mxu1  ;;  %v1082_v26 = vpop.f32.mrb[10].mxu0 }
 0x399   :  { %v1004_v27 = vadd.f32 %v6601_v22, %v1003_v25  ;;  %v5741_v28 = vpop.f32.mrb[9].mxu1  ;;  %v5746_v29 = vpop.f32.mrb[11].mxu0  ;;  %v1083_v30 = vadd.f32 %v6606_v23, %v1082_v26 }
 0x39a   :  { %v5412_v29 = vld [vmem:[%s7278_s4 + $0x5] ss:$0 sm:$0xff] }
 0x39b   :  { %v1171_v31 = vadd.f32 %v6611_v24, %v1004_v27  ;;  %v1184_v36 = vadd.f32 %v6619_v32, %v1083_v30 }
 0x39c   :  { %v1161_v33 = vpop.f32.mrb[10].mxu1 }
 0x39d   :  { %v5376_v34 = vmul.f32 -1.442695, %v1171_v31  ;;  %v5751_v35 = vpop.f32.mrb[11].mxu1  ;;  %v5378_v41 = vmul.f32 -1.442695, %v1184_v36  ;;  %v1162_v48 = vadd.f32 %v5372_v37, %v1161_v33 }
 0x39f   :  { %6146 = vpow2.f32 %v5376_v34 }
 0x3a0   :  { %v1411_v38 = vpop.f32.mrb[14].mxu0  ;;  %6148 = vpow2.f32 %v5378_v41 }
 0x3a1   :  { %v6625_v39 = vadd.f32 %v5372_v37, %v1411_v38  ;;  %v5766_v40 = vpop.f32.mrb[15].mxu0 }
 0x3a9   :  { %v6147_v42 = vpop.eup %6146 }
 0x3aa   :  { %v1175_v43 = vadd.f32 1.0, %v6147_v42  ;;  %v6149_v44 = vpop.eup %6148 }
 0x3ab   :  { %v1188_v45 = vadd.f32 1.0, %v6149_v44  ;;  %v6745_v44 = vld [vmem:[%s7279_s5 + $0x5] ss:$0 sm:$0xff] }
 0x3ac   :  { %6150 = vrcp.f32 %v1175_v43 }
 0x3ad   :  { %6152 = vrcp.f32 %v1188_v45 }
 0x3b6   :  { %v6151_v47 = vpop.eup %6150 }
 0x3b7   :  { %v1197_v49 = vmul.f32 %v6151_v47, %v6630_v46  ;;  %v6153_v51 = vpop.eup %6152 }
 0x3b8   :  { %v1200_v52 = vsub.f32 1.0, %v6153_v51 }
 0x3b9   :  { %v1198_v50 = vadd.f32 %v1197_v49, %v1162_v48 }
 0x3bb   :  { %6154 = vtanh.f32 %v1198_v50 }
 0x3c5   :  { %v6155_v53 = vpop.eup %6154 }
 0x3c6   :  { %v6633_v54 = vmul.f32 %v6155_v53, %v1200_v52 }
 0x3c8   :  { %5770 = vmatmul.mubr.msk.f32.vlgmr.msra.gmra.mrb[12].mxu0 %vm929_vm6, %v6633_v54  ;;  %5775 = vmatmul.mubr.msk.f32.vlgmr.msra.gmra.mrb[12].mxu1 %vm929_vm6, %v6633_v54 }
 0x3c9   :  { %5778 = vmatpush3.msk.msra.mxu1 %vm933_vm5, %v5361_v55  ;;  %5779 = vmatprep.mubr.msk.f32.mxu1 %vm6279_vm2, %v6278_v1 }
 0x3ca   :  { %5783 = vmatpush3.msk.msra.mxu0 %vm933_vm5, %v5394_v56  ;;  %5784 = vmatprep.mubr.msk.f32.mxu0 %vm6279_vm2, %v6278_v1 }
 0x3cb   :  { %5787 = vmatprep.subr.mxu1 %v6278_v1  ;;  %5792 = vmatprep.subr.mxu0 %v6278_v1 }
 0x3cc   :  { %5780 = vmatmul.mubr.msk.f32.vlgmr.msra.gmra.mrb[14].mxu1 %vm929_vm6, %v6633_v54  ;;  %5785 = vmatmul.mubr.msk.f32.vlgmr.msra.gmra.mrb[16].mxu0 %vm929_vm6, %v6564_v18 }
 0x3cd   :  { %5788 = vmatpush3.msk.msra.mxu1 %vm933_vm5, %v5395_v57  ;;  %5789 = vmatprep.mubr.msk.f32.mxu1 %vm6279_vm2, %v6278_v1 }
 0x3ce   :  { %5793 = vmatpush3.msk.msra.mxu0 %vm933_vm5, %v5396_v58  ;;  %5794 = vmatprep.mubr.msk.f32.mxu0 %vm6279_vm2, %v6278_v1 }
 0x3cf   :  { %5797 = vmatprep.subr.mxu1 %v6278_v1  ;;  %5802 = vmatprep.subr.mxu0 %v6278_v1 }
 0x3d0   :  { %5790 = vmatmul.mubr.msk.f32.vlgmr.msra.gmra.mrb[16].mxu1 %vm929_vm6, %v6564_v18  ;;  %5795 = vmatmul.mubr.msk.f32.vlgmr.msra.gmra.mrb[18].mxu0 %vm929_vm6, %v6564_v18  ;;  %v6731_v18 = vld [vmem:[%s7279_s5 + $0x4] ss:$0 sm:$0xff] }
 0x3d1   :  { %5798 = vmatpush3.msk.msra.mxu1 %vm933_vm5, %v5394_v56  ;;  %5799 = vmatprep.mubr.msk.f32.mxu1 %vm6279_vm2, %v6278_v1 }
 0x3d2   :  { %5803 = vmatpush3.msk.msra.mxu0 %vm933_vm5, %v5395_v57  ;;  %5804 = vmatprep.mubr.msk.f32.mxu0 %vm6279_vm2, %v6278_v1 }
 0x3d3   :  { %5807 = vmatprep.subr.mxu1 %v6278_v1  ;;  %5817 = vmatprep.subr.mxu0 %v6278_v1 }
 0x3d4   :  { %5800 = vmatmul.mubr.msk.f32.vlgmr.msra.gmra.mrb[18].mxu1 %vm929_vm6, %v6552_v16  ;;  %5805 = vmatmul.mubr.msk.f32.vlgmr.msra.gmra.mrb[20].mxu0 %vm929_vm6, %v6552_v16 }
 0x3d5   :  { %5808 = vmatpush3.msk.msra.mxu1 %vm933_vm5, %v5396_v58  ;;  %5809 = vmatprep.mubr.msk.f32.mxu1 %vm6279_vm2, %v6278_v1 }
 0x3d6   :  { %5812 = vmatprep.subr.mxu1 %v6278_v1  ;;  %5819 = vmatprep.mubr.msk.f32.mxu0 %vm6279_vm2, %v6278_v1 }
 0x3d7   :  { %5818 = vmatpush3.msk.msra.mxu0 %vm933_vm5, %v5398_v60 }
 0x3d8   :  { %5810 = vmatmul.mubr.msk.f32.vlgmr.msra.gmra.mrb[20].mxu1 %vm929_vm6, %v6552_v16  ;;  %5822 = vmatprep.subr.mxu0 %v6278_v1 }
 0x3d9   :  { %5814 = vmatprep.mubr.msk.f32.mxu1 %vm6279_vm2, %v6278_v1  ;;  %5813 = vmatpush3.msk.msra.mxu1 %vm933_vm5, %v5397_v59 }
 0x3da   :  { %5827 = vmatprep.subr.mxu1 %v6278_v1 }
 0x49b   :  { %v1487_v62 = vpop.f32.mrb[12].mxu0  ;;  %v1560_v63 = vpop.f32.mrb[12].mxu1 }
 0x49c   :  { %v6067_v3 = vadd.f32 %v6066_v61, %v1487_v62  ;;  %v5771_v4 = vpop.f32.mrb[13].mxu0  ;;  %v5776_v5 = vpop.f32.mrb[13].mxu1  ;;  %v6069_v8 = vadd.f32 %v6068_v0, %v1560_v63  ;;  %v5399_v61 = vld [vmem:[%s7277_s1 + $0x28] sm:$0x1f]  ;;  %v6070_v62 = vadd.f32 %v6719_v10, %v6714_v6 }
 0x49e   :  { %v5392_v7 = vmul.f32 -1.442695, %v6067_v3  ;;  %v5393_v17 = vmul.f32 -1.442695, %v6069_v8  ;;  %v6072_v3 = vadd.f32 %v6731_v18, %v6725_v15 }
 0x49f   :  { %v1633_v9 = vpop.f32.mrb[14].mxu1  ;;  %v1757_v11 = vpop.f32.mrb[16].mxu0 }
 0x4a0   :  { %6156 = vpow2.f32 %v5392_v7  ;;  %v1758_v12 = vadd.f32 %v6714_v6, %v1757_v11  ;;  %v5781_v13 = vpop.f32.mrb[15].mxu1  ;;  %v5786_v14 = vpop.f32.mrb[17].mxu0  ;;  %v1634_v38 = vadd.f32 %v6630_v46, %v1633_v9  ;;  %v6781_v9 = vld [vmem:[%s7280_s28 + $0x10] sm:$0x1f] }
 0x4a2   :  { %v1925_v16 = vadd.f32 %v6719_v10, %v1758_v12 }
 0x4a3   :  { %v1836_v19 = vpop.f32.mrb[16].mxu1  ;;  %v1915_v20 = vpop.f32.mrb[18].mxu0 }
 0x4a4   :  { %v5416_v21 = vmul.f32 -1.442695, %v1925_v16  ;;  %v1837_v22 = vadd.f32 %v6725_v15, %v1836_v19  ;;  %v5791_v23 = vpop.f32.mrb[17].mxu1  ;;  %v5796_v24 = vpop.f32.mrb[19].mxu0  ;;  %v1916_v47 = vadd.f32 %v5412_v29, %v1915_v20  ;;  %v5438_v15 = vld [vmem:[%s7280_s28 + $0x8] sm:$0x1f] }
 0x4a6   :  { %6158 = vpow2.f32 %v5416_v21  ;;  %v1938_v25 = vadd.f32 %v6731_v18, %v1837_v22 }
 0x4a7   :  { %6160 = vpow2.f32 %v5393_v17 }
 0x4a8   :  { %v5418_v26 = vmul.f32 -1.442695, %v1938_v25 }
 0x4aa   :  { %v6157_v27 = vpop.eup %6156  ;;  %6162 = vpow2.f32 %v5418_v26 }
 0x4ab   :  { %v1641_v28 = vadd.f32 1.0, %v6157_v27  ;;  %v2162_v30 = vpop.f32.mrb[20].mxu1 }
 0x4ac   :  { %v6738_v31 = vadd.f32 %v5412_v29, %v2162_v30  ;;  %v5811_v32 = vpop.f32.mrb[21].mxu1 }
 0x4ad   :  { %6164 = vrcp.f32 %v1641_v28 }
 0x4b0   :  { %v6159_v33 = vpop.eup %6158 }
 0x4b1   :  { %v6161_v34 = vpop.eup %6160  ;;  %v1929_v35 = vadd.f32 1.0, %v6159_v33 }
 0x4b2   :  { %v1648_v36 = vadd.f32 1.0, %v6161_v34 }
 0x4b3   :  { %6166 = vrcp.f32 %v1929_v35 }
 0x4b4   :  { %v6163_v37 = vpop.eup %6162  ;;  %6168 = vrcp.f32 %v1648_v36 }
 0x4b5   :  { %v1942_v43 = vadd.f32 1.0, %v6163_v37 }
 0x4b7   :  { %v6165_v40 = vpop.eup %6164 }
 0x4b8   :  { %v1651_v41 = vmul.f32 %v6165_v40, %v1634_v38 }
 0x4ba   :  { %v1652_v42 = vadd.f32 %v1651_v41, %v6625_v39 }
 0x4bc   :  { %6170 = vtanh.f32 %v1652_v42 }
 0x4bd   :  { %v6167_v45 = vpop.eup %6166  ;;  %6172 = vrcp.f32 %v1942_v43  ;;  %v6832_v43 = vld [vmem:[%s7237_s13 + $0x2] ss:$0 sm:$0xff] }
 0x4be   :  { %v1951_v48 = vmul.f32 %v6167_v45, %v6745_v44  ;;  %v6169_v50 = vpop.eup %6168 }
 0x4bf   :  { %v1654_v46 = vsub.f32 1.0, %v6169_v50  ;;  %v1656_v52 = vmul.f32 %v6169_v50, %v6633_v54  ;;  %v2559_v54 = vld [vmem:[%s7280_s28] sm:$0x1f] }
 0x4c0   :  { %v1952_v49 = vadd.f32 %v1951_v48, %v1916_v47 }
 0x4c2   :  { %6174 = vtanh.f32 %v1952_v49 }
 0x4c6   :  { %v6171_v51 = vpop.eup %6170 }
 0x4c7   :  { %v1655_v39 = vmul.f32 %v6171_v51, %v1654_v46  ;;  %v6173_v53 = vpop.eup %6172  ;;  %v5440_v46 = vld [vmem:[%s7236_s12 + $0x8] sm:$0x1f] }
 0x4c8   :  { %v1954_v56 = vsub.f32 1.0, %v6173_v53  ;;  %v6863_v53 = vld [vmem:[%s7238_s14 + $0x1] ss:$0 sm:$0xff] }
 0x4c9   :  { %v1657_v55 = vadd.f32 %v1656_v52, %v1655_v39  ;;  %v6849_v52 = vld [vmem:[%s7237_s13 + $0x1] ss:$0 sm:$0xff] }
 0x4ca   :  { %v2564_v39 = vld [vmem:[%s7236_s12] sm:$0x1f] }
 0x4cb   :  { %v2409_v57 = vmul.f32 0.01, %v1657_v55 }
 0x4cc   :  { %v6175_v58 = vpop.eup %6174 }
 0x4cd   :  { %v1955_v59 = vmul.f32 %v6175_v58, %v1954_v56  ;;  %v2410_v60 = vmax.f32 %v1657_v55, %v2409_v57 }
 0x4cf   :  { %5815 = vmatmul.mubr.msk.f32.vlgmr.msra.gmra.mrb[18].mxu1 %vm929_vm6, %v1955_v59  ;;  %5820 = vmatmul.mubr.msk.f32.vlgmr.msra.gmra.mrb[20].mxu0 %vm929_vm6, %v1955_v59 }
 0x4d0   :  { %5828 = vmatpush3.msk.msra.mxu1 %vm93_vm0, %v2410_v60  ;;  %5823 = vmatpush3.msk.msra.mxu0 %vm933_vm5, %v5399_v61 }
 0x4d1   :  { %5824 = vmatprep.mubr.msk.f32.mxu0 %vm6279_vm2, %v6278_v1  ;;  %5829 = vmatprep.mubr.msk.f32.mxu1 %vm6279_vm2, %v6278_v1 }
 0x4d2   :  { %5837 = vmatprep.subr.mxu1 %v6278_v1  ;;  %5832 = vmatprep.subr.mxu0 %v6278_v1 }
 0x4d3   :  { %5825 = vmatmul.mubr.msk.f32.vlgmr.msra.gmra.mrb[22].mxu0 %vm929_vm6, %v1955_v59  ;;  %5830 = vmatmul.mubr.msk.f32.vlgmr.msra.gmra.mrb[22].mxu1 %vm89_vm1, %v6432_v2 }
 0x4d4   :  { %5839 = vmatprep.mubr.msk.f32.mxu1 %vm6279_vm2, %v6278_v1  ;;  %5834 = vmatprep.mubr.msk.f32.mxu0 %vm6279_vm2, %v6278_v1 }
 0x4d5   :  { %5838 = vmatpush3.msk.msra.mxu1 %vm933_vm5, %v2559_v54 }
 0x4d6   :  { %5847 = vmatprep.subr.mxu1 %v6278_v1 }
 0x5a2   :  { %v2238_v63 = vpop.f32.mrb[18].mxu1  ;;  %v2311_v0 = vpop.f32.mrb[20].mxu0 }
 0x5a3   :  { %v6071_v4 = vadd.f32 %v6070_v62, %v2238_v63  ;;  %v5816_v5 = vpop.f32.mrb[19].mxu1  ;;  %v5821_v7 = vpop.f32.mrb[21].mxu0  ;;  %v6073_v11 = vadd.f32 %v6072_v3, %v2311_v0  ;;  %v5441_v3 = vld [vmem:[%s7236_s12 + $0x10] sm:$0x1f] }
 0x5a4   :  { %v5475_v5 = vld [vmem:[%s7280_s28 + $0x20] sm:$0x1f]  ;;  %v5476_v7 = vld [vmem:[%s7280_s28 + $0x28] sm:$0x1f] }
 0x5a5   :  { %v5432_v8 = vmul.f32 -1.442695, %v6071_v4  ;;  %v5433_v14 = vmul.f32 -1.442695, %v6073_v11  ;;  %v5474_v4 = vld [vmem:[%s7280_s28 + $0x18] sm:$0x1f] }
 0x5a6   :  { %v2384_v12 = vpop.f32.mrb[22].mxu0  ;;  %v6783_v13 = vpop.f32.mrb[22].mxu1 }
 0x5a7   :  { %6176 = vpow2.f32 %v5432_v8  ;;  %v5826_v6 = vpop.f32.mrb[23].mxu0  ;;  %5840 = vmatmul.mubr.msk.f32.vlgmr.msra.gmra.mrb[24].mxu1 %vm929_vm6, %v6783_v13  ;;  %v5831_v10 = vpop.f32.mrb[23].mxu1  ;;  %v2385_v20 = vadd.f32 %v6745_v44, %v2384_v12  ;;  %v6837_v44 = vld [vmem:[%s7238_s14 + $0x2] ss:$0 sm:$0xff]  ;;  %v5477_v8 = vld [vmem:[%s7236_s12 + $0x18] sm:$0x1f] }
 0x5a8   :  { %5848 = vmatpush3.msk.msra.mxu1 %vm933_vm5, %v6781_v9  ;;  %5849 = vmatprep.mubr.msk.f32.mxu1 %vm6279_vm2, %v6278_v1  ;;  %6178 = vpow2.f32 %v5433_v14  ;;  %v6076_v14 = vadd.f32 %v6863_v53, %v6849_v52 }
 0x5a9   :  { %5857 = vmatprep.subr.mxu1 %v6278_v1 }
 0x5ab   :  { %5850 = vmatmul.mubr.msk.f32.vlgmr.msra.gmra.mrb[26].mxu1 %vm929_vm6, %v6783_v13 }
 0x5ac   :  { %5858 = vmatpush3.msk.msra.mxu1 %vm933_vm5, %v5438_v15  ;;  %5859 = vmatprep.mubr.msk.f32.mxu1 %vm6279_vm2, %v6278_v1 }
 0x5ad   :  { %5872 = vmatprep.subr.mxu1 %v6278_v1 }
 0x5b1   :  { %v6177_v16 = vpop.eup %6176 }
 0x5b2   :  { %v2392_v17 = vadd.f32 1.0, %v6177_v16  ;;  %v6179_v18 = vpop.eup %6178 }
 0x5b3   :  { %v2399_v19 = vadd.f32 1.0, %v6179_v18  ;;  %v6953_v18 = vld [vmem:[%s7237_s13 + $0x3] ss:$0 sm:$0xff] }
 0x5b4   :  { %6180 = vrcp.f32 %v2392_v17 }
 0x5b5   :  { %6182 = vrcp.f32 %v2399_v19 }
 0x5be   :  { %v6181_v21 = vpop.eup %6180 }
 0x5bf   :  { %v2402_v22 = vmul.f32 %v6181_v21, %v2385_v20  ;;  %v6183_v24 = vpop.eup %6182 }
 0x5c0   :  { %v2405_v25 = vsub.f32 1.0, %v6183_v24  ;;  %v2407_v27 = vmul.f32 %v6183_v24, %v1955_v59 }
 0x5c1   :  { %v2403_v23 = vadd.f32 %v2402_v22, %v6738_v31  ;;  %v6825_v31 = vld [vmem:[%s7238_s14] ss:$0 sm:$0xff]  ;;  %v6958_v22 = vld [vmem:[%s7238_s14 + $0x3] ss:$0 sm:$0xff] }
 0x5c3   :  { %6184 = vtanh.f32 %v2403_v23 }
 0x5cd   :  { %v6185_v26 = vpop.eup %6184 }
 0x5ce   :  { %v2406_v28 = vmul.f32 %v6185_v26, %v2405_v25 }
 0x5d0   :  { %v2408_v29 = vadd.f32 %v2407_v27, %v2406_v28  ;;  %v6964_v27 = vld [vmem:[%s7237_s13 + $0x4] ss:$0 sm:$0xff] }
 0x5d2   :  { %v2411_v30 = vmul.f32 0.01, %v2408_v29 }
 0x5d4   :  { %v2412_v32 = vmax.f32 %v2408_v29, %v2411_v30  ;;  %v6970_v30 = vld [vmem:[%s7238_s14 + $0x4] ss:$0 sm:$0xff] }
 0x5d6   :  { %5833 = vmatpush3.msk.msra.mxu0 %vm93_vm0, %v2412_v32 }
 0x5d7   :  { %5835 = vmatmul.mubr.msk.f32.vlgmr.msra.gmra.mrb[24].mxu0 %vm89_vm1, %v6432_v2  ;;  %5842 = vmatprep.subr.mxu0 %v6278_v1  ;;  %v6820_v2 = vld [vmem:[%s7237_s13] ss:$0 sm:$0xff] }
 0x5d8   :  { %5843 = vmatpush3.msk.msra.mxu0 %vm933_vm5, %v5438_v15  ;;  %5844 = vmatprep.mubr.msk.f32.mxu0 %vm6279_vm2, %v6278_v1 }
 0x5d9   :  { %5852 = vmatprep.subr.mxu0 %v6278_v1 }
 0x5db   :  { %5845 = vmatmul.mubr.msk.f32.vlgmr.msra.gmra.mrb[26].mxu0 %vm929_vm6, %v6783_v13 }
 0x5dc   :  { %5853 = vmatpush3.msk.msra.mxu0 %vm933_vm5, %v2559_v54  ;;  %5854 = vmatprep.mubr.msk.f32.mxu0 %vm6279_vm2, %v6278_v1 }
 0x5dd   :  { %5862 = vmatprep.subr.mxu0 %v6278_v1 }
 0x67a   :  { %v2657_v33 = vpop.f32.mrb[24].mxu1 }
 0x67b   :  { %v2658_v34 = vadd.f32 %v6820_v2, %v2657_v33  ;;  %v5841_v35 = vpop.f32.mrb[25].mxu1 }
 0x67d   :  { %v2825_v36 = vadd.f32 %v6825_v31, %v2658_v34 }
 0x67e   :  { %v2815_v37 = vpop.f32.mrb[26].mxu1 }
 0x67f   :  { %v5456_v38 = vmul.f32 -1.442695, %v2825_v36  ;;  %v5851_v40 = vpop.f32.mrb[27].mxu1  ;;  %v2816_v45 = vadd.f32 %v6832_v43, %v2815_v37 }
 0x681   :  { %6186 = vpow2.f32 %v5456_v38 }
 0x68b   :  { %v6187_v41 = vpop.eup %6186 }
 0x68c   :  { %v2829_v42 = vadd.f32 1.0, %v6187_v41  ;;  %v5492_v41 = vld [vmem:[%s7237_s13 + $0x5] ss:$0 sm:$0xff] }
 0x68e   :  { %6188 = vrcp.f32 %v2829_v42 }
 0x698   :  { %v6189_v47 = vpop.eup %6188 }
 0x699   :  { %v2851_v48 = vmul.f32 %v6189_v47, %v6837_v44 }
 0x69b   :  { %v2852_v49 = vadd.f32 %v2851_v48, %v2816_v45 }
 0x6aa   :  { %v2555_v50 = vpop.f32.mrb[24].mxu0 }
 0x6ab   :  { %5855 = vmatmul.mubr.msk.f32.vlgmr.msra.gmra.mrb[28].mxu0 %vm929_vm6, %v2555_v50  ;;  %v5836_v51 = vpop.f32.mrb[25].mxu0  ;;  %5860 = vmatmul.mubr.msk.f32.vlgmr.msra.gmra.mrb[28].mxu1 %vm929_vm6, %v2555_v50 }
 0x6ac   :  { %5863 = vmatpush3.msk.msra.mxu0 %vm933_vm5, %v6781_v9  ;;  %5864 = vmatprep.mubr.msk.f32.mxu0 %vm6279_vm2, %v6278_v1  ;;  %v5478_v9 = vld [vmem:[%s7236_s12 + $0x20] sm:$0x1f] }
 0x6ad   :  { %5867 = vmatprep.subr.mxu0 %v6278_v1  ;;  %5873 = vmatpush3.msk.msra.mxu1 %vm933_vm5, %v5440_v46 }
 0x6ae   :  { %v2736_v55 = vpop.f32.mrb[26].mxu0  ;;  %5874 = vmatprep.mubr.msk.f32.mxu1 %vm6279_vm2, %v6278_v1  ;;  %5877 = vmatprep.subr.mxu1 %v6278_v1 }
 0x6af   :  { %v2737_v56 = vadd.f32 %v6849_v52, %v2736_v55  ;;  %v5846_v57 = vpop.f32.mrb[27].mxu0  ;;  %5865 = vmatmul.mubr.msk.f32.vlgmr.msra.gmra.mrb[30].mxu0 %vm929_vm6, %v2555_v50 }
 0x6b0   :  { %5868 = vmatpush3.msk.msra.mxu0 %vm933_vm5, %v2564_v39  ;;  %5869 = vmatprep.mubr.msk.f32.mxu0 %vm6279_vm2, %v6278_v1 }
 0x6b1   :  { %v2838_v58 = vadd.f32 %v6863_v53, %v2737_v56  ;;  %5882 = vmatprep.subr.mxu0 %v6278_v1 }
 0x6b3   :  { %v5458_v59 = vmul.f32 -1.442695, %v2838_v58  ;;  %v6984_v58 = vld [vmem:[%s7238_s14 + $0x5] ss:$0 sm:$0xff]  ;;  %s7281_s14 = sld [smem:[#allocation10_spill]] }
 0x6b5   :  { %6190 = vpow2.f32 %v5458_v59 }
 0x6bf   :  { %v6191_v60 = vpop.eup %6190 }
 0x6c0   :  { %v2842_v61 = vadd.f32 1.0, %v6191_v60 }
 0x6c2   :  { %6192 = vrcp.f32 %v2842_v61 }
 0x6c3   :  { %6194 = vtanh.f32 %v2852_v49 }
 0x6cc   :  { %v6193_v54 = vpop.eup %6192 }
 0x6cd   :  { %v2854_v62 = vsub.f32 1.0, %v6193_v54  ;;  %v6195_v63 = vpop.eup %6194 }
 0x6cf   :  { %v6875_v0 = vmul.f32 %v6195_v63, %v2854_v62 }
 0x6d1   :  { %5870 = vmatmul.mubr.msk.f32.vlgmr.msra.gmra.mrb[28].mxu0 %vm929_vm6, %v6875_v0  ;;  %5875 = vmatmul.mubr.msk.f32.vlgmr.msra.gmra.mrb[28].mxu1 %vm929_vm6, %v6875_v0 }
 0x6d2   :  { %5878 = vmatpush3.msk.msra.mxu1 %vm933_vm5, %v5441_v3  ;;  %5879 = vmatprep.mubr.msk.f32.mxu1 %vm6279_vm2, %v6278_v1 }
 0x6d3   :  { %5883 = vmatpush3.msk.msra.mxu0 %vm933_vm5, %v5474_v4  ;;  %5884 = vmatprep.mubr.msk.f32.mxu0 %vm6279_vm2, %v6278_v1 }
 0x6d4   :  { %5887 = vmatprep.subr.mxu1 %v6278_v1  ;;  %5892 = vmatprep.subr.mxu0 %v6278_v1 }
 0x6d5   :  { %5880 = vmatmul.mubr.msk.f32.vlgmr.msra.gmra.mrb[30].mxu1 %vm929_vm6, %v6875_v0  ;;  %5885 = vmatmul.mubr.msk.f32.vlgmr.msra.gmra.mrb[32].mxu0 %vm929_vm6, %v2555_v50 }
 0x6d6   :  { %5888 = vmatpush3.msk.msra.mxu1 %vm933_vm5, %v5475_v5  ;;  %5889 = vmatprep.mubr.msk.f32.mxu1 %vm6279_vm2, %v6278_v1 }
 0x6d7   :  { %5893 = vmatpush3.msk.msra.mxu0 %vm933_vm5, %v5476_v7  ;;  %5894 = vmatprep.mubr.msk.f32.mxu0 %vm6279_vm2, %v6278_v1 }
 0x6d8   :  { %5897 = vmatprep.subr.mxu1 %v6278_v1  ;;  %5902 = vmatprep.subr.mxu0 %v6278_v1 }
 0x6d9   :  { %5890 = vmatmul.mubr.msk.f32.vlgmr.msra.gmra.mrb[32].mxu1 %vm929_vm6, %v2555_v50  ;;  %5895 = vmatmul.mubr.msk.f32.vlgmr.msra.gmra.mrb[34].mxu0 %vm929_vm6, %v2555_v50 }
 0x6da   :  { %5898 = vmatpush3.msk.msra.mxu1 %vm933_vm5, %v5474_v4  ;;  %5899 = vmatprep.mubr.msk.f32.mxu1 %vm6279_vm2, %v6278_v1 }
 0x6db   :  { %5903 = vmatpush3.msk.msra.mxu0 %vm933_vm5, %v5475_v5  ;;  %5904 = vmatprep.mubr.msk.f32.mxu0 %vm6279_vm2, %v6278_v1 }
 0x6dc   :  { %5907 = vmatprep.subr.mxu1 %v6278_v1  ;;  %5917 = vmatprep.subr.mxu0 %v6278_v1 }
 0x6dd   :  { %5900 = vmatmul.mubr.msk.f32.vlgmr.msra.gmra.mrb[34].mxu1 %vm929_vm6, %v6783_v13  ;;  %5905 = vmatmul.mubr.msk.f32.vlgmr.msra.gmra.mrb[36].mxu0 %vm929_vm6, %v6783_v13 }
 0x6de   :  { %5908 = vmatpush3.msk.msra.mxu1 %vm933_vm5, %v5476_v7  ;;  %5909 = vmatprep.mubr.msk.f32.mxu1 %vm6279_vm2, %v6278_v1 }
 0x6df   :  { %5912 = vmatprep.subr.mxu1 %v6278_v1  ;;  %5919 = vmatprep.mubr.msk.f32.mxu0 %vm6279_vm2, %v6278_v1 }
 0x6e0   :  { %5918 = vmatpush3.msk.msra.mxu0 %vm933_vm5, %v5478_v9 }
 0x6e1   :  { %5910 = vmatmul.mubr.msk.f32.vlgmr.msra.gmra.mrb[36].mxu1 %vm929_vm6, %v6783_v13  ;;  %5922 = vmatprep.subr.mxu0 %v6278_v1  ;;  %v6074_v13 = vadd.f32 %v6825_v31, %v6820_v2 }
 0x6e2   :  { %5914 = vmatprep.mubr.msk.f32.mxu1 %vm6279_vm2, %v6278_v1  ;;  %5913 = vmatpush3.msk.msra.mxu1 %vm933_vm5, %v5477_v8 }
 0x6e3   :  { %5927 = vmatprep.subr.mxu1 %v6278_v1 }
 0x782   :  { %v3065_v11 = vpop.f32.mrb[30].mxu0 }
 0x783   :  { %v5866_v12 = vpop.f32.mrb[31].mxu0  ;;  %v3066_v53 = vadd.f32 %v6832_v43, %v3065_v11  ;;  %v5479_v11 = vld [vmem:[%s7236_s12 + $0x28] sm:$0x1f] }
 0x7a4   :  { %v3141_v6 = vpop.f32.mrb[28].mxu0  ;;  %v3214_v10 = vpop.f32.mrb[28].mxu1 }
 0x7a5   :  { %v6075_v15 = vadd.f32 %v6074_v13, %v3141_v6  ;;  %v5871_v16 = vpop.f32.mrb[29].mxu0  ;;  %v5876_v17 = vpop.f32.mrb[29].mxu1  ;;  %v6077_v20 = vadd.f32 %v6076_v14, %v3214_v10  ;;  %v4069_v13 = vld [vmem:[%s7239_s15] sm:$0x1f]  ;;  %v6078_v10 = vadd.f32 %v6958_v22, %v6953_v18 }
 0x7a6   :  { %v4147_v6 = vld [vmem:[%s7240_s16] sm:$0x1f]  ;;  %v6080_v16 = vadd.f32 %v6970_v30, %v6964_v27 }
 0x7a7   :  { %v5472_v19 = vmul.f32 -1.442695, %v6075_v15  ;;  %v5473_v29 = vmul.f32 -1.442695, %v6077_v20 }
 0x7a8   :  { %v3287_v21 = vpop.f32.mrb[30].mxu1  ;;  %v3411_v23 = vpop.f32.mrb[32].mxu0 }
 0x7a9   :  { %6196 = vpow2.f32 %v5472_v19  ;;  %v3412_v24 = vadd.f32 %v6953_v18, %v3411_v23  ;;  %v5881_v25 = vpop.f32.mrb[31].mxu1  ;;  %v5886_v26 = vpop.f32.mrb[33].mxu0  ;;  %v3288_v52 = vadd.f32 %v6837_v44, %v3287_v21  ;;  %v5020_v18 = vld [vmem:[%s7243_s19 + $0x10] sm:$0xff] }
 0x7aa   :  { %v5018_v25 = vld [vmem:[%s7243_s19] sm:$0xff]  ;;  %v5019_v26 = vld [vmem:[%s7243_s19 + $0x8] sm:$0xff] }
 0x7ab   :  { %v3579_v28 = vadd.f32 %v6958_v22, %v3412_v24 }
 0x7ac   :  { %v3490_v32 = vpop.f32.mrb[32].mxu1  ;;  %v3569_v2 = vpop.f32.mrb[34].mxu0 }
 0x7ad   :  { %v5496_v31 = vmul.f32 -1.442695, %v3579_v28  ;;  %v3491_v33 = vadd.f32 %v6964_v27, %v3490_v32  ;;  %v5891_v34 = vpop.f32.mrb[33].mxu1  ;;  %v5896_v35 = vpop.f32.mrb[35].mxu0  ;;  %v3570_v60 = vadd.f32 %v5492_v41, %v3569_v2  ;;  %v6280_v27 = vmov 0.0|0.0  }
 0x7ae   :  { %v6037_v28 = vpack.c.bf16 %v5019_v26, %v5018_v25  ;;  %v5107_v25 = vld [vmem:[%s7245_s21 + $0x20] sm:$0xff]  ;;  %v5108_v26 = vld [vmem:[%s7245_s21 + $0x28] sm:$0xff] }
 0x7af   :  { %6198 = vpow2.f32 %v5496_v31  ;;  %v3592_v36 = vadd.f32 %v6970_v30, %v3491_v33 }
 0x7b0   :  { %6200 = vpow2.f32 %v5473_v29  ;;  %v5021_v29 = vld [vmem:[%s7243_s19 + $0x18] sm:$0xff] }
 0x7b1   :  { %v5498_v37 = vmul.f32 -1.442695, %v3592_v36  ;;  %v6040_v30 = vpack.c.bf16 %v5021_v29, %v5020_v18  ;;  %v6055_v18 = vpack.c.bf16 %v5108_v26, %v5107_v25 }
 0x7b3   :  { %v6197_v38 = vpop.eup %6196  ;;  %6202 = vpow2.f32 %v5498_v37 }
 0x7b4   :  { %v3295_v40 = vadd.f32 1.0, %v6197_v38  ;;  %v3816_v42 = vpop.f32.mrb[36].mxu1 }
 0x7b5   :  { %v6977_v45 = vadd.f32 %v5492_v41, %v3816_v42  ;;  %v5911_v47 = vpop.f32.mrb[37].mxu1 }
 0x7b6   :  { %6204 = vrcp.f32 %v3295_v40 }
 0x7b9   :  { %v6199_v48 = vpop.eup %6198 }
 0x7ba   :  { %v6201_v49 = vpop.eup %6200  ;;  %v3583_v50 = vadd.f32 1.0, %v6199_v48 }
 0x7bb   :  { %v3302_v46 = vadd.f32 1.0, %v6201_v49 }
 0x7bc   :  { %6206 = vrcp.f32 %v3583_v50 }
 0x7bd   :  { %v6203_v51 = vpop.eup %6202  ;;  %6208 = vrcp.f32 %v3302_v46 }
 0x7be   :  { %v3596_v57 = vadd.f32 1.0, %v6203_v51  ;;  %v4225_v51 = vld [vmem:[%s7241_s17] sm:$0x3f] }
 0x7c0   :  { %v6205_v39 = vpop.eup %6204 }
 0x7c1   :  { %v3305_v55 = vmul.f32 %v6205_v39, %v3288_v52  ;;  %v5520_v52 = vld [vmem:[%s7239_s15 + $0x8] sm:$0x1f] }
 0x7c3   :  { %v3306_v56 = vadd.f32 %v3305_v55, %v3066_v53  ;;  %v5523_v53 = vld [vmem:[%s7240_s16 + $0x8] sm:$0x1f] }
 0x7c5   :  { %6210 = vtanh.f32 %v3306_v56  ;;  %v5526_v56 = vld [vmem:[%s7241_s17 + $0x8] sm:$0x3f] }
 0x7c6   :  { %v6207_v59 = vpop.eup %6206  ;;  %6212 = vrcp.f32 %v3596_v57 }
 0x7c7   :  { %v3605_v61 = vmul.f32 %v6207_v59, %v6984_v58  ;;  %v6209_v44 = vpop.eup %6208 }
 0x7c8   :  { %v3308_v62 = vsub.f32 1.0, %v6209_v44  ;;  %v3310_v63 = vmul.f32 %v6209_v44, %v6875_v0 }
 0x7c9   :  { %v3606_v54 = vadd.f32 %v3605_v61, %v3570_v60  ;;  %v5532_v60 = vld [vmem:[%s7240_s16 + $0x10] sm:$0x1f] }
 0x7cb   :  { %6214 = vtanh.f32 %v3606_v54  ;;  %v5535_v54 = vld [vmem:[%s7241_s17 + $0x10] sm:$0x3f] }
 0x7cf   :  { %v6211_v43 = vpop.eup %6210 }
 0x7d0   :  { %v3309_v3 = vmul.f32 %v6211_v43, %v3308_v62  ;;  %v6213_v4 = vpop.eup %6212  ;;  %v5538_v62 = vld [vmem:[%s7239_s15 + $0x18] sm:$0x1f] }
 0x7d1   :  { %v3608_v7 = vsub.f32 1.0, %v6213_v4  ;;  %v5544_v4 = vld [vmem:[%s7241_s17 + $0x18] sm:$0x3f] }
 0x7d2   :  { %v3311_v5 = vadd.f32 %v3310_v63, %v3309_v3  ;;  %v5541_v63 = vld [vmem:[%s7240_s16 + $0x18] sm:$0x1f] }
 0x7d4   :  { %v4063_v12 = vmul.f32 0.01, %v3311_v5 }
 0x7d5   :  { %v6215_v8 = vpop.eup %6214 }
 0x7d6   :  { %v3609_v9 = vmul.f32 %v6215_v8, %v3608_v7  ;;  %v7002_v0 = vmax.f32 %v3311_v5, %v4063_v12  ;;  %v5022_v7 = vld [vmem:[%s7243_s19 + $0x20] sm:$0xff]  ;;  %v5023_v8 = vld [vmem:[%s7243_s19 + $0x28] sm:$0xff]  ;;  %v5025_v12 = vld [vmem:[%s7243_s19 + $0x38] sm:$0xff] }
 0x7d8   :  { %5915 = vmatmul.mubr.msk.f32.vlgmr.msra.gmra.mrb[34].mxu1 %vm929_vm6, %v3609_v9  ;;  %5920 = vmatmul.mubr.msk.f32.vlgmr.msra.gmra.mrb[36].mxu0 %vm929_vm6, %v3609_v9  ;;  %v4307_v39 = vrot.slane %v7002_v0, 1  ;;  %v4544_v59 = vrot.slane %v7002_v0, 2  ;;  %v4781_v43 = vrot.slane %v7002_v0, 3 }
 0x7d9   :  { %5923 = vmatpush3.msk.msra.mxu0 %vm933_vm5, %v5479_v11  ;;  %5924 = vmatprep.mubr.msk.f32.mxu0 %vm6279_vm2, %v6278_v1  ;;  %v5024_v11 = vld [vmem:[%s7243_s19 + $0x30] sm:$0xff] }
 0x7da   :  { %5928 = vmatpush3.msk.msra.mxu1 %vm933_vm5, %v4069_v13  ;;  %5929 = vmatprep.mubr.msk.f32.mxu1 %vm6279_vm2, %v6278_v1  ;;  %v6046_v13 = vpack.c.bf16 %v5025_v12, %v5024_v11 }
 0x7db   :  { %5932 = vmatprep.subr.mxu1 %v6278_v1  ;;  %6036 = vmatprep.subr.bf16.mxu0 %v6280_v27 }
 0x7dc   :  { %5925 = vmatmul.mubr.msk.f32.vlgmr.msra.gmra.mrb[38].mxu0 %vm929_vm6, %v3609_v9  ;;  %5930 = vmatmul.mubr.msk.f32.vlgmr.msra.gmra.mrb[38].mxu1 %vm929_vm6, %v7002_v0  ;;  %v4068_v0 = vld [vmem:[%s7242_s18] sm:$0x1] }
 0x7dd   :  { %5934 = vmatprep.mubr.msk.f32.mxu1 %vm6279_vm2, %v6278_v1  ;;  %6003 = vmatprep.mubr.msk.f32.mxu0 %vm6279_vm2, %v6278_v1 }
 0x7de   :  { %5933 = vmatpush3.msk.msra.mxu1 %vm933_vm5, %v4147_v6  ;;  %6038 = vmatpush3.bf16.msra.mxu0 %v6037_v28  ;;  %v5110_v28 = vld [vmem:[%s7245_s21 + $0x38] sm:$0xff] }
 0x7df   :  { %5937 = vmatprep.subr.mxu1 %v6278_v1  ;;  %6039 = vmatprep.subr.bf16.mxu0 %v6280_v27 }
 0x7e2   :  { %6041 = vmatpush3.bf16.msra.mxu0 %v6040_v30  ;;  %v5026_v30 = vld [vmem:[%s7244_s20] sm:$0x1] }
 0x7e3   :  { %6042 = vmatprep.subr.bf16.mxu0 %v6280_v27 }
 0x8ab   :  { %v3892_v14 = vpop.f32.mrb[34].mxu1  ;;  %v3965_v15 = vpop.f32.mrb[36].mxu0 }
 0x8ac   :  { %v6079_v17 = vadd.f32 %v6078_v10, %v3892_v14  ;;  %v5916_v19 = vpop.f32.mrb[35].mxu1  ;;  %v5921_v20 = vpop.f32.mrb[37].mxu0  ;;  %v6081_v23 = vadd.f32 %v6080_v16, %v3965_v15  ;;  %v5103_v15 = vld [vmem:[%s7245_s21] sm:$0xff]  ;;  %v5104_v16 = vld [vmem:[%s7245_s21 + $0x8] sm:$0xff] }
 0x8ad   :  { %v6049_v19 = vpack.c.bf16 %v5104_v16, %v5103_v15 }
 0x8ae   :  { %v5512_v21 = vmul.f32 -1.442695, %v6079_v17  ;;  %v5513_v32 = vmul.f32 -1.442695, %v6081_v23  ;;  %v5106_v23 = vld [vmem:[%s7245_s21 + $0x18] sm:$0xff] }
 0x8af   :  { %v4038_v24 = vpop.f32.mrb[38].mxu0 }
 0x8b0   :  { %6216 = vpow2.f32 %v5512_v21  ;;  %v5926_v22 = vpop.f32.mrb[39].mxu0  ;;  %v4039_v35 = vadd.f32 %v6984_v58, %v4038_v24  ;;  %v5529_v58 = vld [vmem:[%s7239_s15 + $0x10] sm:$0x1f] }
 0x8b1   :  { %6218 = vpow2.f32 %v5513_v32  ;;  %v5105_v21 = vld [vmem:[%s7245_s21 + $0x10] sm:$0xff] }
 0x8b2   :  { %v6052_v24 = vpack.c.bf16 %v5106_v23, %v5105_v21  ;;  %v5109_v22 = vld [vmem:[%s7245_s21 + $0x30] sm:$0xff] }
 0x8b3   :  { %v6058_v29 = vpack.c.bf16 %v5110_v28, %v5109_v22 }
 0x8ba   :  { %v6217_v2 = vpop.eup %6216 }
 0x8bb   :  { %v4046_v31 = vadd.f32 1.0, %v6217_v2  ;;  %v6219_v33 = vpop.eup %6218 }
 0x8bc   :  { %v4053_v34 = vadd.f32 1.0, %v6219_v33 }
 0x8bd   :  { %6220 = vrcp.f32 %v4046_v31 }
 0x8be   :  { %6222 = vrcp.f32 %v4053_v34 }
 0x8c7   :  { %v6221_v36 = vpop.eup %6220 }
 0x8c8   :  { %v4056_v37 = vmul.f32 %v6221_v36, %v4039_v35  ;;  %v6223_v40 = vpop.eup %6222  ;;  %v5187_v35 = vld [vmem:[%s7247_s23] sm:$0xff]  ;;  %v5188_v36 = vld [vmem:[%s7247_s23 + $0x8] sm:$0xff] }
 0x8c9   :  { %v4059_v41 = vsub.f32 1.0, %v6223_v40  ;;  %v4061_v47 = vmul.f32 %v6223_v40, %v3609_v9  ;;  %v6043_v9 = vpack.c.bf16 %v5023_v8, %v5022_v7 }
 0x8ca   :  { %v4057_v38 = vadd.f32 %v4056_v37, %v6977_v45  ;;  %v4067_v45 = vld [vmem:[%s7281_s14] sm:$0xf]  ;;  %v6061_v37 = vpack.c.bf16 %v5188_v36, %v5187_v35 }
 0x8cb   :  { %v4465_v57 = vrot.slane %v4067_v45, 1  ;;  %v4702_v44 = vrot.slane %v4067_v45, 2  ;;  %v4939_v5 = vrot.slane %v4067_v45, 3  ;;  %6044 = vmatpush3.bf16.msra.mxu0 %v6043_v9 }
 0x8cc   :  { %6224 = vtanh.f32 %v4057_v38  ;;  %6045 = vmatprep.subr.bf16.mxu0 %v6280_v27  ;;  %v5189_v38 = vld [vmem:[%s7247_s23 + $0x10] sm:$0xff] }
 0x8cf   :  { %6047 = vmatpush3.bf16.msra.mxu0 %v6046_v13 }
 0x8d0   :  { %6048 = vmatprep.subr.bf16.mxu0 %v6280_v27 }
 0x8d6   :  { %v6225_v42 = vpop.eup %6224 }
 0x8d7   :  { %v4060_v48 = vmul.f32 %v6225_v42, %v4059_v41  ;;  %v5111_v41 = vld [vmem:[%s7246_s22] sm:$0x1] }
 0x8d9   :  { %v4062_v49 = vadd.f32 %v4061_v47, %v4060_v48 }
 0x8db   :  { %v4065_v50 = vmul.f32 0.01, %v4062_v49 }
 0x8dd   :  { %v4066_v46 = vmax.f32 %v4062_v49, %v4065_v50  ;;  %v5191_v50 = vld [vmem:[%s7248_s24] sm:$0x1]  ;;  %s5297_s24 = sshll.u32 %s6281_s2, 4  ;;  %s5298_s24 = int_to_ptr.vmem [resolvable:$true] %s5297_s24 }
 0x8de   :  { %s6230_s18 = scalar_lea.vmem %s5298_s24, 16  ;;  %s6234_s5 = scalar_lea.vmem %s5298_s24, 32 }
 0x8df   :  { %5935 = vmatmul.mubr.msk.f32.vlgmr.msra.gmra.mrb[38].mxu1 %vm929_vm6, %v4066_v46  ;;  %v4386_v55 = vrot.slane %v4066_v46, 1  ;;  %v4623_v61 = vrot.slane %v4066_v46, 2  ;;  %v4860_v3 = vrot.slane %v4066_v46, 3  ;;  %p6231_p0 = scmp.ne.s32.totalorder %s5298_s24, %s6230_s18  ;;  %p6235_p1 = scmp.lt.s32.totalorder %s5298_s24, %s5298_s24 }
 0x8e0   :  { %5938 = vmatpush3.msk.msra.mxu1 %vm4230_vm7, %v4225_v51  ;;  %5939 = vmatprep.mubr.msk.f32.mxu1 %vm6279_vm2, %v6278_v1  ;;  %p6236_p2 = scmp.lt.s32.totalorder %s6234_s5, %s6230_s18 }
 0x8e1   :  { %5942 = vmatprep.subr.mxu1 %v6278_v1 }
 0x8e2   :  { %p6237_p3 = por %p6236_p2, %p6235_p1 }
 0x8e4   :  { %p6238_p4 = pnand %p6237_p3, %p6231_p0 }
 0x8e7   :  { %5940 = vmatmul.mubr.msk.f32.vlgmr.msra.gmra.mrb[38].mxu1 %vm4226_vm8, %v4067_v45 }
 0x8e8   :  { %5943 = vmatpush3.msk.msra.mxu1 %vm933_vm5, %v5520_v52  ;;  %5944 = vmatprep.mubr.msk.f32.mxu1 %vm6279_vm2, %v6278_v1 }
 0x8e9   :  { %5947 = vmatprep.subr.mxu1 %v6278_v1 }
 0x8ef   :  { %5945 = vmatmul.mubr.msk.f32.vlgmr.msra.gmra.mrb[38].mxu1 %vm929_vm6, %v4307_v39 }
 0x8f0   :  { %5948 = vmatpush3.msk.msra.mxu1 %vm933_vm5, %v5523_v53  ;;  %5949 = vmatprep.mubr.msk.f32.mxu1 %vm6279_vm2, %v6278_v1 }
 0x8f1   :  { %5952 = vmatprep.subr.mxu1 %v6278_v1 }
 0x8f7   :  { %5950 = vmatmul.mubr.msk.f32.vlgmr.msra.gmra.mrb[38].mxu1 %vm929_vm6, %v4386_v55  ;;  %v5274_v55 = vld [vmem:[%s7249_s25] sm:$0x1] }
 0x8f8   :  { %5953 = vmatpush3.msk.msra.mxu1 %vm4230_vm7, %v5526_v56  ;;  %5954 = vmatprep.mubr.msk.f32.mxu1 %vm6279_vm2, %v6278_v1 }
 0x8f9   :  { %5957 = vmatprep.subr.mxu1 %v6278_v1 }
 0x8ff   :  { %5955 = vmatmul.mubr.msk.f32.vlgmr.msra.gmra.mrb[38].mxu1 %vm4226_vm8, %v4465_v57 }
 0x900   :  { %5958 = vmatpush3.msk.msra.mxu1 %vm933_vm5, %v5529_v58  ;;  %5959 = vmatprep.mubr.msk.f32.mxu1 %vm6279_vm2, %v6278_v1 }
 0x901   :  { %5962 = vmatprep.subr.mxu1 %v6278_v1 }
 0x907   :  { %5960 = vmatmul.mubr.msk.f32.vlgmr.msra.gmra.mrb[38].mxu1 %vm929_vm6, %v4544_v59 }
 0x908   :  { %5963 = vmatpush3.msk.msra.mxu1 %vm933_vm5, %v5532_v60  ;;  %5964 = vmatprep.mubr.msk.f32.mxu1 %vm6279_vm2, %v6278_v1 }
 0x909   :  { %5967 = vmatprep.subr.mxu1 %v6278_v1 }
 0x90f   :  { %5965 = vmatmul.mubr.msk.f32.vlgmr.msra.gmra.mrb[38].mxu1 %vm929_vm6, %v4623_v61 }
 0x910   :  { %5968 = vmatpush3.msk.msra.mxu1 %vm4230_vm7, %v5535_v54  ;;  %5969 = vmatprep.mubr.msk.f32.mxu1 %vm6279_vm2, %v6278_v1 }
 0x911   :  { %5972 = vmatprep.subr.mxu1 %v6278_v1 }
 0x917   :  { %5970 = vmatmul.mubr.msk.f32.vlgmr.msra.gmra.mrb[38].mxu1 %vm4226_vm8, %v4702_v44 }
 0x918   :  { %5973 = vmatpush3.msk.msra.mxu1 %vm933_vm5, %v5538_v62  ;;  %5974 = vmatprep.mubr.msk.f32.mxu1 %vm6279_vm2, %v6278_v1 }
 0x919   :  { %5977 = vmatprep.subr.mxu1 %v6278_v1 }
 0x91f   :  { %5975 = vmatmul.mubr.msk.f32.vlgmr.msra.gmra.mrb[38].mxu1 %vm929_vm6, %v4781_v43 }
 0x920   :  { %5978 = vmatpush3.msk.msra.mxu1 %vm933_vm5, %v5541_v63  ;;  %5979 = vmatprep.mubr.msk.f32.mxu1 %vm6279_vm2, %v6278_v1 }
 0x921   :  { %5982 = vmatprep.subr.mxu1 %v6278_v1 }
 0x927   :  { %5980 = vmatmul.mubr.msk.f32.vlgmr.msra.gmra.mrb[38].mxu1 %vm929_vm6, %v4860_v3 }
 0x928   :  { %5983 = vmatpush3.msk.msra.mxu1 %vm4230_vm7, %v5544_v4  ;;  %5984 = vmatprep.mubr.msk.f32.mxu1 %vm6279_vm2, %v6278_v1 }
 0x92f   :  { %5985 = vmatmul.mubr.msk.f32.vlgmr.msra.gmra.mrb[38].mxu1 %vm4226_vm8, %v4939_v5 }
 0xa02   :  { %v5011_v6 = vpop.f32.mrb[38].mxu1 }
 0xa03   :  { %v6082_v10 = vadd.f32 %v5011_v6, %v4068_v0  ;;  %v5986_v14 = vpop.f32.mrb[39].mxu1 }
 0xa05   :  { %v5016_v17 = vmul.f32 0.01, %v6082_v10 }
 0xa07   :  { %v5017_v20 = vmax.f32 %v6082_v10, %v5016_v17 }
 0xa09   :  { %6004 = vmatmul.mubr.msk.f32.vlgmr.msra.gmra.mrb[40].mxu0 %vm5027_vm9, %v5017_v20 }
 0xa0a   :  { %6050 = vmatpush3.bf16.msra.mxu0 %v6049_v19  ;;  %6022 = vmatprep.mubr.msk.f32.mxu0 %vm6279_vm2, %v6278_v1 }
 0xa0b   :  { %6051 = vmatprep.subr.bf16.mxu0 %v6280_v27 }
 0xa0e   :  { %6053 = vmatpush3.bf16.msra.mxu0 %v6052_v24 }
 0xa0f   :  { %6054 = vmatprep.subr.bf16.mxu0 %v6280_v27 }
 0xa12   :  { %6056 = vmatpush3.bf16.msra.mxu0 %v6055_v18 }
 0xa13   :  { %6057 = vmatprep.subr.bf16.mxu0 %v6280_v27 }
 0xa16   :  { %6059 = vmatpush3.bf16.msra.mxu0 %v6058_v29 }
 0xa17   :  { %6060 = vmatprep.subr.bf16.mxu0 %v6280_v27 }
 0xadc   :  { %v5097_v32 = vpop.f32.mrb[40].mxu0 }
 0xadd   :  { %v5098_v2 = vadd.f32 %v5097_v32, %v5026_v30  ;;  %v6005_v31 = vpop.f32.mrb[41].mxu0 }
 0xadf   :  { %v5101_v33 = vmul.f32 0.01, %v5098_v2 }
 0xae1   :  { %v5102_v34 = vmax.f32 %v5098_v2, %v5101_v33 }
 0xae3   :  { %6023 = vmatmul.mubr.msk.f32.vlgmr.msra.gmra.mrb[42].mxu0 %vm5027_vm9, %v5102_v34 }
 0xae4   :  { %6033 = vmatprep.mubr.msk.f32.mxu0 %vm6279_vm2, %v6278_v1  ;;  %6062 = vmatpush3.bf16.msra.mxu0 %v6061_v37  ;;  %v5190_v1 = vld [vmem:[%s7247_s23 + $0x18] sm:$0xff] }
 0xae5   :  { %6063 = vmatprep.subr.bf16.mxu0 %v6280_v27  ;;  %v6064_v40 = vpack.c.bf16 %v5190_v1, %v5189_v38 }
 0xae8   :  { %6065 = vmatpush3.bf16.msra.mxu0 %v6064_v40 }
 0xbb6   :  { %v5181_v42 = vpop.f32.mrb[42].mxu0 }
 0xbb7   :  { %v5182_v47 = vadd.f32 %v5181_v42, %v5111_v41  ;;  %v6024_v48 = vpop.f32.mrb[43].mxu0 }
 0xbb9   :  { %v5185_v49 = vmul.f32 0.01, %v5182_v47 }
 0xbbb   :  { %v5186_v27 = vmax.f32 %v5182_v47, %v5185_v49 }
 0xbbd   :  { %6034 = vmatmul.mubr.msk.f32.vlgmr.msra.gmra.mrb[44].mxu0 %vm5192_vm10, %v5186_v27 }
 0xc90   :  { %v5262_v46 = vpop.f32.mrb[44].mxu0 }
 0xc91   :  { %v5263_v51 = vadd.f32 %v5262_v46, %v5191_v50  ;;  %v6035_v45 = vpop.f32.mrb[45].mxu0 }
 0xc93   :  { %v5550_v52 = vmul.f32 -1.442695, %v5263_v51 }
 0xc95   :  { %6226 = vpow2.f32 %v5550_v52 }
 0xc9f   :  { %v6227_v39 = vpop.eup %6226 }
 0xca0   :  { %v5269_v53 = vadd.f32 1.0, %v6227_v39 }
 0xca2   :  { %6228 = vrcp.f32 %v5269_v53 }
 0xcac   :  { %v6229_v56 = vpop.eup %6228 }
 0xcad   :  { %v5275_v57 = vmul.f32 %v6229_v56, %v5274_v55  ;;  %5273 = vst.msk [vmem:[#allocation4] sm:$0x1] %vm5272_vm11, %v6229_v56 }
 0xcaf   :  { %v5276_v58 = vsel %vm5272_vm11, %v5275_v57, 0.0 }
 0xcb0   :  { %5277 = vadd.xlane.f32.xlu0 %v5276_v58 }
 0xcb1   :  { %6241 = shalt.err (!%p6238_p4)
}
 0xcb2   :  { %s6242_s25 = scalar_lea.hbm %s7251_s27, 16 }
 0xcb3   :  { %p6243_p5 = scmp.ne.s32.totalorder %s7251_s27, %s6242_s25  ;;  %p6246_p6 = scmp.lt.u32.totalorder %s6242_s25, %s7251_s27 }
 0xcb5   :  { %p6248_p7 = pnand %p6246_p6, %p6243_p5 }
 0xcb7   :  { %6251 = shalt.err (!%p6248_p7)
}
 0xcb8   :  { %5300 = dma.vmem_to_hbm [thread:$0]  %s5298_s24, 16, %s7251_s27, [#allocation5]   ;;  %vm5279_vm12 = vcmask 0  }
 0xcb9   :  { %s6282_s6 = smov [#allocation2]  }
 0xcba   :  { %s5287_s17 = sshll.u32 %s6282_s6, 4  ;;  %s5288_s17 = int_to_ptr.vmem [resolvable:$true] %s5287_s17 }
 0xcbb   :  { %s6252_s30 = scalar_lea.vmem %s5288_s17, 16  ;;  %s6256_s21 = scalar_lea.vmem %s5288_s17, 32 }
 0xcbc   :  { %p6253_p8 = scmp.ne.s32.totalorder %s5288_s17, %s6252_s30  ;;  %p6257_p9 = scmp.lt.s32.totalorder %s5288_s17, %s5288_s17 }
 0xcbd   :  { %p6258_p10 = scmp.lt.s32.totalorder %s6256_s21, %s6252_s30 }
 0xcbf   :  { %p6259_p11 = por %p6258_p10, %p6257_p9 }
 0xcc1   :  { %p6260_p12 = pnand %p6259_p11, %p6253_p8 }
 0xd3d   :  { %v5278_v59 = vpop.xlane.xlu0 %5277 }
 0xd3e   :  { %5280 = vst.msk [vmem:[#allocation2] sm:$0x1] %vm5279_vm12, %v5278_v59 }
 0xd3f   :  { %6263 = shalt.err (!%p6260_p12)
}
 0xd40   :  { %s6264_s20 = scalar_lea.hbm %s7250_s26, 16 }
 0xd41   :  { %p6265_p13 = scmp.ne.s32.totalorder %s7250_s26, %s6264_s20  ;;  %p6268_p0 = scmp.lt.u32.totalorder %s6264_s20, %s7250_s26 }
 0xd43   :  { %p6270_p1 = pnand %p6268_p0, %p6265_p13 }
 0xd45   :  { %6273 = shalt.err (!%p6270_p1)
}
 0xd46   :  { %5290 = dma.vmem_to_hbm [thread:$0]  %s5288_s17, 16, %s7250_s26, [#allocation3]  }
 0xd47   :  { %6274 = dma.done.wait [#allocation3], 16  }
 0xd48   :  { %6275 = vsyncadd [#allocation3], 4294967280 }
 0xd49   :  { %6276 = dma.done.wait [#allocation5], 16  }
 0xd4a   :  { %6277 = vsyncadd [#allocation5], 4294967280 }
 0xd4b   :  { %5307 = vsyncpa [#allocation3], 1 }
 0xd4c   :  { %5308 = vsyncpa [#allocation5], 1 }

</bundles_post_ra>
